<compile_context>
chip_gen: v7x
topology: tpu7x:2x2x1
jax: 0.10.0
libtpu: 0.0.40
codegen_flags: <defaults>
</compile_context>

<pallas_src>
import functools
import math

import numpy as np
import jax
import jax.numpy as jnp
from jax import lax
from jax.experimental import pallas as pl
from jax.experimental.pallas import tpu as pltpu

# (dy, dx) of the single -1 tap of kernels k1..k8 (unit offsets; scaled by dilation).
_NEIGHBOR_OFFSETS = ((-1, -1), (-1, 0), (-1, 1), (0, 1), (1, 1), (1, 0), (1, -1), (0, -1))


def _round_up(v, m):
    return ((v + m - 1) // m) * m


# ------------------------------------------------------------------------------
# Fused kernel (one batch element per grid step):
#   - build the 8 dilated, zero-padded "contrast" taps per head with pltpu.roll + mask,
#   - ONE bf16 MXU dot producing Q/K/V already in viewed-head grouped order,
#   - per viewed head: L2-norm fixup, scaled K Q^T, InstanceNorm, softmax, @V,
#   - 1x1 out_conv dot, BatchNorm partial statistics.
# ------------------------------------------------------------------------------
def _fused_kernel(x_ref, mask_ref, w_big_ref, w_out_ref,
                  z_ref, stat_ref,
                  stack_scr, qkv_scr, attn_scr,
                  *, nh, Cp, hidden, hidden_p, HC8, H, W, shifts, inv_sqrt_area):
    HW = H * W
    Rv = hidden_p + 2 * HC8                       # rows per viewed head: [Q_pad ; K ; V]

    x = x_ref[0]                                  # (Cp, HW) f32
    stack_scr[0:Cp, :] = x.astype(jnp.bfloat16)

    # ---- 8 masked dilated taps per original head, built in VMEM (never hit HBM) ----
    # TODO(synk): for nh >= 4 switch these static loops to lax.fori_loop with pl.ds.
    for i in range(nh):
        d = int(shifts[i])
        for j, (dy, dx) in enumerate(_NEIGHBOR_OFFSETS):
            s = dy * d * W + dx * d                       # flattened-HW offset of tap
            rolled = pltpu.roll(x, (-s) % HW, 1)          # rolled[p] = x[(p + s) % HW]
            m = mask_ref[i * 8 + j:i * 8 + j + 1, :]      # (1, HW) zero-pad border mask
            row0 = (1 + i * 8 + j) * Cp
            stack_scr[row0:row0 + Cp, :] = (rolled * m).astype(jnp.bfloat16)

    # ---- one fused bf16 QKV projection, rows already in viewed-head order ----------
    qkv_scr[...] = jnp.dot(w_big_ref[...], stack_scr[...],
                           preferred_element_type=jnp.float32)     # (M, HW) f32

    # ---- attention per viewed head --------------------------------------------------
    for ip in range(nh):
        base = ip * Rv
        q = qkv_scr[base:base + hidden_p, :]                        # (hidden_p, HW)
        k = qkv_scr[base + hidden_p:base + hidden_p + HC8, :]       # (HC8, HW)
        v = qkv_scr[base + hidden_p + HC8:base + Rv, :]             # (HC8, HW)

        # F.normalize(dim=-1), eps=1e-12: q normalized explicitly (few rows); k handled
        # with a post-dot per-row inverse-norm scale (free sublane broadcast).
        qinv = 1.0 / jnp.maximum(jnp.sqrt(jnp.sum(q * q, axis=-1, keepdims=True)), 1e-12)
        kinv = 1.0 / jnp.maximum(jnp.sqrt(jnp.sum(k * k, axis=-1, keepdims=True)), 1e-12)
        qn = (q * qinv).astype(jnp.bfloat16)

        # sT[kc, qr] = <k_kc, q_qr / ||q_qr||> ;  scale rows by 1/||k|| and 1/sqrt(area)
        sT = lax.dot_general(k.astype(jnp.bfloat16), qn,
                             (((1,), (1,)), ((), ())),
                             preferred_element_type=jnp.float32)    # (HC8, hidden_p)
        sT = sT * (kinv * inv_sqrt_area)

        # InstanceNorm2d(num_heads): per (batch, head) stats over the real (hidden, HC8)
        # score entries (padded query columns excluded), eps=1e-5, no affine.
        cnt = float(hidden * HC8)
        if hidden_p != hidden:
            cmask = (lax.broadcasted_iota(jnp.int32, (1, hidden_p), 1) < hidden
                     ).astype(jnp.float32)
            mu = jnp.sum(sT * cmask) / cnt
            var = jnp.sum(((sT - mu) * cmask) ** 2) / cnt
        else:
            mu = jnp.sum(sT) / cnt
            var = jnp.sum((sT - mu) ** 2) / cnt
        snT = (sT - mu) * lax.rsqrt(var + 1e-5)

        # softmax over the key axis (axis 0 of the transposed scores).
        mx = jnp.max(snT, axis=0, keepdims=True)
        e = jnp.exp(snT - mx)
        pT = e / jnp.sum(e, axis=0, keepdims=True)                  # (HC8, hidden_p)

        # out = p @ v  ==  pT^T @ v   (lhs-transposed contraction, no explicit transpose)
        attn_scr[ip * hidden_p:(ip + 1) * hidden_p, :] = lax.dot_general(
            pT.astype(jnp.bfloat16), v.astype(jnp.bfloat16),
            (((0,), (0,)), ((), ())),
            preferred_element_type=jnp.float32)                     # (hidden_p, HW)

    # ---- out_conv 1x1 (grouped / zero-padded columns) + BN partial statistics -------
    z = jnp.dot(w_out_ref[...], attn_scr[...].astype(jnp.bfloat16),
                preferred_element_type=jnp.float32)                 # (Cp, HW)
    z_ref[0] = z
    stat_ref[0, :, 0:1] = jnp.sum(z, axis=-1, keepdims=True)
    stat_ref[0, :, 1:2] = jnp.sum(z * z, axis=-1, keepdims=True)


# ------------------------------------------------------------------------------
# BatchNorm2d (train-mode batch stats, gamma=1, beta=0) apply + ReLU, batch-blocked.
# ------------------------------------------------------------------------------
def _bn_relu_kernel(z_ref, ss_ref, o_ref, *, bblk):
    scale = ss_ref[:, 0:1]                        # (Cp, 1)
    shift = ss_ref[:, 1:2]
    for i in range(bblk):
        o_ref[i] = jnp.maximum(z_ref[i] * scale + shift, 0.0)


# ------------------------------------------------------------------------------
# Wrapper: fold softmax mixing coefficients + 1x1 convs + head re-interleave into one
# pre-permuted fused weight, build border masks, run the two pallas_calls.
# ------------------------------------------------------------------------------
@functools.partial(jax.jit, static_argnums=(2,))
def expansion_contrast_forward(cen, params, shifts):
    b, C, H, W = cen.shape
    HW = H * W
    nh = len(shifts)
    hidden = C // nh
    HC8 = hidden * 8
    Cp = _round_up(C, 16)                       # 16-aligned for bf16 packing
    hidden_p = _round_up(hidden, 8)
    Rv = hidden_p + 2 * HC8
    M = nh * Rv
    KD = (1 + 8 * nh) * Cp
    # NOTE: module's self.area == width*height from the constructor; assumed == H*W.
    area = H * W

    # ---- zero-pad border masks for every (head, tap) --------------------------------
    ys, xs = np.divmod(np.arange(HW), W)
    masks_np = np.zeros((nh * 8, HW), np.float32)
    for i, d in enumerate(shifts):
        for j, (dy, dx) in enumerate(_NEIGHBOR_OFFSETS):
            ty, tx = ys + dy * d, xs + dx * d
            masks_np[i * 8 + j] = ((ty >= 0) & (ty < H) & (tx >= 0) & (tx < W)).astype(np.float32)
    masks = jnp.asarray(masks_np).astype(jnp.bfloat16)

    # ---- fold softmax mixing coefficients into the key/value conv weights -----------
    sw = jax.nn.softmax(params["sum_weights"], axis=-1)     # (nh, C, 2)
    a = sw[..., 0]
    bfull = sw[..., 1]
    bb = bfull / 8.0                                        # kernel0 tap weight
    ab = a + bfull                                          # center-tap weight (== 1)

    wq = params["wq"]                                       # (nh, hidden, C)
    wk = params["wk"].reshape(nh, HC8, 8, C)
    wv = params["wv"].reshape(nh, HC8, 8, C)
    wk_sum = jnp.sum(wk, axis=2)                            # (nh, HC8, C)
    wv_sum = jnp.sum(wv, axis=2)
    wk_shift = wk * a[:, None, None, :] + wk_sum[:, :, None, :] * bb[:, None, None, :]
    wv_shift = wv * a[:, None, None, :] + wv_sum[:, :, None, :] * bb[:, None, None, :]
    wk_x = wk_sum * ab[:, None, :]
    wv_x = wv_sum * ab[:, None, :]

    def pad_last(w, n):
        return jnp.pad(w, [(0, 0)] * (w.ndim - 1) + [(0, n - w.shape[-1])])

    eye = jnp.eye(nh, dtype=jnp.float32)

    def head_full(w_x, w_shift):
        # rows over the stacked input [x ; tap(0,0..7) ; ... ; tap(nh-1,0..7)]
        R = w_x.shape[1]
        xblk = pad_last(w_x, Cp)[:, :, None, :]                             # (nh,R,1,Cp)
        taps = -pad_last(w_shift, Cp)                                       # (nh,R,8,Cp)
        tap_blocks = jnp.einsum('hg,hrjc->hrgjc', eye, taps)                # own-head only
        tap_blocks = tap_blocks.reshape(nh, R, nh * 8, Cp)
        return jnp.concatenate([xblk, tap_blocks], axis=2).reshape(nh, R, KD)

    wq_full = jnp.concatenate(
        [pad_last(wq, Cp)[:, :, None, :],
         jnp.zeros((nh, hidden, 8 * nh, Cp), jnp.float32)], axis=2).reshape(nh, hidden, KD)
    wk_full = head_full(wk_x, wk_shift)
    wv_full = head_full(wv_x, wv_shift)

    def to_viewed(w_full):
        # torch stack(dim=2).view(): flattened row g = c*nh + i  ->  viewed head g // R
        R = w_full.shape[1]
        return w_full.transpose(1, 0, 2).reshape(nh, R, KD)

    q_v = jnp.pad(to_viewed(wq_full), ((0, 0), (0, hidden_p - hidden), (0, 0)))
    k_v = to_viewed(wk_full)
    v_v = to_viewed(wv_full)
    w_big = jnp.concatenate([q_v, k_v, v_v], axis=1).reshape(M, KD).astype(jnp.bfloat16)

    # out_conv weight: columns regrouped per viewed head, zero columns for padded rows.
    w_out = params["w_out"].reshape(C, nh, hidden)
    w_out = jnp.pad(w_out, ((0, Cp - C), (0, 0), (0, hidden_p - hidden)))
    w_out_g = w_out.reshape(Cp, nh * hidden_p).astype(jnp.bfloat16)

    x_flat = jnp.pad(cen.reshape(b, C, HW).astype(jnp.float32),
                     ((0, 0), (0, Cp - C), (0, 0)))                     # (b, Cp, HW)

    # ---- VMEM budget (blocks are double-buffered by the pipeline) -------------------
    blk_bytes = (2 * Cp * HW * 4            # x
                 + 2 * Cp * HW * 4          # z
                 + 2 * Cp * 2 * 4           # stats
                 + 2 * nh * 8 * HW * 2      # masks
                 + 2 * M * KD * 2           # w_big
                 + 2 * Cp * nh * hidden_p * 2)
    scratch_bytes = KD * HW * 2 + M * HW * 4 + nh * hidden_p * HW * 4
    vmem_limit = int(min(64 << 20, max(32 << 20,
                                       int(1.4 * (blk_bytes + scratch_bytes)) + (1 << 20))))

    # ---- call 1: taps + fused QKV + attention + out_conv + BN partial stats ---------
    z, stats = pl.pallas_call(
        functools.partial(
            _fused_kernel, nh=nh, Cp=Cp, hidden=hidden, hidden_p=hidden_p, HC8=HC8,
            H=H, W=W, shifts=tuple(int(s) for s in shifts),
            inv_sqrt_area=1.0 / math.sqrt(area)),
        grid=(b,),
        in_specs=[
            pl.BlockSpec((1, Cp, HW), lambda bi: (bi, 0, 0)),
            pl.BlockSpec((nh * 8, HW), lambda bi: (0, 0)),
            pl.BlockSpec((M, KD), lambda bi: (0, 0)),
            pl.BlockSpec((Cp, nh * hidden_p), lambda bi: (0, 0)),
        ],
        out_specs=(
            pl.BlockSpec((1, Cp, HW), lambda bi: (bi, 0, 0)),
            pl.BlockSpec((1, Cp, 2), lambda bi: (bi, 0, 0)),
        ),
        out_shape=(
            jax.ShapeDtypeStruct((b, Cp, HW), jnp.float32),
            jax.ShapeDtypeStruct((b, Cp, 2), jnp.float32),
        ),
        scratch_shapes=[
            pltpu.VMEM((KD, HW), jnp.bfloat16),            # stacked [x ; 8*nh masked taps]
            pltpu.VMEM((M, HW), jnp.float32),              # grouped Q/K/V per viewed head
            pltpu.VMEM((nh * hidden_p, HW), jnp.float32),  # attention rows
        ],
        compiler_params=pltpu.CompilerParams(
            dimension_semantics=("parallel",),
            vmem_limit_bytes=vmem_limit),
    )(x_flat, masks, w_big, w_out_g)

    # ---- BatchNorm2d batch statistics (train mode, gamma=1, beta=0) -----------------
    # TODO(synk): running-stat (momentum buffer) updates are stateful and not replicated.
    n = float(b * HW)
    sums = jnp.sum(stats, axis=0)                          # (Cp, 2)
    mu = sums[:, 0] / n
    var = jnp.maximum(sums[:, 1] / n - mu * mu, 0.0)
    scale = lax.rsqrt(var + 1e-5)
    shift = -mu * scale
    ss = jnp.stack([scale, shift], axis=-1)                # (Cp, 2)

    # batch-blocked BN+ReLU, output aliased onto z (no extra HBM allocation).
    bblk = b
    while bblk > 1 and ((b % bblk) != 0 or bblk * Cp * HW * 4 * 4 > (16 << 20)):
        bblk -= 1

    y = pl.pallas_call(
        functools.partial(_bn_relu_kernel, bblk=bblk),
        grid=(b // bblk,),
        in_specs=[
            pl.BlockSpec((bblk, Cp, HW), lambda bi: (bi, 0, 0)),
            pl.BlockSpec((Cp, 2), lambda bi: (0, 0)),
        ],
        out_specs=pl.BlockSpec((bblk, Cp, HW), lambda bi: (bi, 0, 0)),
        out_shape=jax.ShapeDtypeStruct((b, Cp, HW), jnp.float32),
        input_output_aliases={0: 0},
        compiler_params=pltpu.CompilerParams(dimension_semantics=("parallel",)),
    )(z, ss)

    return y[:, :C, :].reshape(b, C, H, W)


def init_params(key, in_channels, shifts):
    nh = len(shifts)
    hidden = in_channels // nh
    ks = jax.random.split(key, 5)
    return {
        # nn.Parameter(torch.randn((in_channels, 1, 1, 1, 2))) per head -> (nh, C, 2)
        "sum_weights": jax.random.normal(ks[0], (nh, in_channels, 2), jnp.float32),
        # 1x1 conv weights (unit spatial dims dropped)
        "wq": 0.1 * jax.random.normal(ks[1], (nh, hidden, in_channels), jnp.float32),
        "wk": 0.1 * jax.random.normal(ks[2], (nh, hidden * 8, in_channels * 8), jnp.float32),
        "wv": 0.1 * jax.random.normal(ks[3], (nh, hidden * 8, in_channels * 8), jnp.float32),
        "w_out": 0.1 * jax.random.normal(ks[4], (in_channels, in_channels), jnp.float32),
    }


if __name__ == "__main__":
    key = jax.random.PRNGKey(0)
    kp, kx = jax.random.split(key)

    B, C, H, W = 2, 4, 16, 16
    shifts = (1, 2)                 # num_heads = 2, hidden_channels = 2

    params = init_params(kp, C, shifts)
    x = jax.random.normal(kx, (B, C, H, W), jnp.float32)

    y = expansion_contrast_forward(x, params, shifts)
    jax.block_until_ready(y)
    assert y.shape == (B, C, H, W)
    assert bool(jnp.all(jnp.isfinite(y)))
    print("KERNEL_OK")
</pallas_src>

<mosaic_0001>
module attributes {stable_mosaic.version = 11 : i64} {
  func.func @_fused_kernel(%arg0: i32, %arg1: memref<1x16x256xf32, #tpu.memory_space<vmem>>, %arg2: memref<16x256xbf16, #tpu.memory_space<vmem>>, %arg3: memref<80x272xbf16, #tpu.memory_space<vmem>>, %arg4: memref<16x16xbf16, #tpu.memory_space<vmem>>, %arg5: memref<1x16x256xf32, #tpu.memory_space<vmem>>, %arg6: memref<1x16x2xf32, #tpu.memory_space<vmem>>, %arg7: memref<272x256xbf16, #tpu.memory_space<vmem>>, %arg8: memref<80x256xf32, #tpu.memory_space<vmem>>, %arg9: memref<16x256xf32, #tpu.memory_space<vmem>>) attributes {dimension_semantics = [#tpu.dimension_semantics<parallel>], iteration_bounds = array<i64: 2>, scalar_prefetch = 0 : i64, scratch_operands = 3 : i64, tpu.core_type = #tpu.core_type<tc>, window_params = [{transform_indices = @transform_0, window_bounds = array<i64: 1, 16, 256>}, {pipeline_mode = #tpu.pipeline_mode<synchronous>, transform_indices = @transform_1, window_bounds = array<i64: 16, 256>}, {pipeline_mode = #tpu.pipeline_mode<synchronous>, transform_indices = @transform_2, window_bounds = array<i64: 80, 272>}, {pipeline_mode = #tpu.pipeline_mode<synchronous>, transform_indices = @transform_3, window_bounds = array<i64: 16, 16>}, {transform_indices = @transform_4, window_bounds = array<i64: 1, 16, 256>}, {transform_indices = @transform_5, window_bounds = array<i64: 1, 16, 2>}]} {
    %c0 = arith.constant 0 : index
    %c0_0 = arith.constant 0 : index
    %c0_1 = arith.constant 0 : index
    %0 = vector.load %arg1[%c0, %c0_0, %c0_1] : memref<1x16x256xf32, #tpu.memory_space<vmem>>, vector<1x16x256xf32>
    %1 = vector.shape_cast %0 : vector<1x16x256xf32> to vector<16x256xf32>
    %2 = arith.truncf %1 : vector<16x256xf32> to vector<16x256xbf16>
    %c0_2 = arith.constant 0 : index
    %c0_3 = arith.constant 0 : index
    %3 = vector.load %arg7[%c0_2, %c0_3] : memref<272x256xbf16, #tpu.memory_space<vmem>>, vector<16x256xbf16>
    tpu.vector_store %arg7[%c0_2, %c0_3], %2 {strides = array<i32>} : memref<272x256xbf16, #tpu.memory_space<vmem>>, vector<16x256xbf16>,
    %c17_i32 = arith.constant 17 : i32
    %4 = tpu.dynamic_rotate %1 by %c17_i32 dim 1 : vector<16x256xf32>, i32 -> vector<16x256xf32>
    %c0_4 = arith.constant 0 : index
    %c0_5 = arith.constant 0 : index
    %5 = vector.load %arg2[%c0_4, %c0_5] : memref<16x256xbf16, #tpu.memory_space<vmem>>, vector<1x256xbf16>
    %6 = arith.extf %5 : vector<1x256xbf16> to vector<1x256xf32>
    %7 = vector.broadcast %6 : vector<1x256xf32> to vector<16x256xf32>
    %8 = arith.mulf %4, %7 : vector<16x256xf32>
    %9 = arith.truncf %8 : vector<16x256xf32> to vector<16x256xbf16>
    %c16 = arith.constant 16 : index
    %c0_6 = arith.constant 0 : index
    %10 = vector.load %arg7[%c16, %c0_6] : memref<272x256xbf16, #tpu.memory_space<vmem>>, vector<16x256xbf16>
    tpu.vector_store %arg7[%c16, %c0_6], %9 {strides = array<i32>} : memref<272x256xbf16, #tpu.memory_space<vmem>>, vector<16x256xbf16>,
    %c16_i32 = arith.constant 16 : i32
    %11 = tpu.dynamic_rotate %1 by %c16_i32 dim 1 : vector<16x256xf32>, i32 -> vector<16x256xf32>
    %c1 = arith.constant 1 : index
    %c0_7 = arith.constant 0 : index
    %12 = vector.load %arg2[%c1, %c0_7] : memref<16x256xbf16, #tpu.memory_space<vmem>>, vector<1x256xbf16>
    %13 = arith.extf %12 : vector<1x256xbf16> to vector<1x256xf32>
    %14 = vector.broadcast %13 : vector<1x256xf32> to vector<16x256xf32>
    %15 = arith.mulf %11, %14 : vector<16x256xf32>
    %16 = arith.truncf %15 : vector<16x256xf32> to vector<16x256xbf16>
    %c32 = arith.constant 32 : index
    %c0_8 = arith.constant 0 : index
    %17 = vector.load %arg7[%c32, %c0_8] : memref<272x256xbf16, #tpu.memory_space<vmem>>, vector<16x256xbf16>
    tpu.vector_store %arg7[%c32, %c0_8], %16 {strides = array<i32>} : memref<272x256xbf16, #tpu.memory_space<vmem>>, vector<16x256xbf16>,
    %c15_i32 = arith.constant 15 : i32
    %18 = tpu.dynamic_rotate %1 by %c15_i32 dim 1 : vector<16x256xf32>, i32 -> vector<16x256xf32>
    %c2 = arith.constant 2 : index
    %c0_9 = arith.constant 0 : index
    %19 = vector.load %arg2[%c2, %c0_9] : memref<16x256xbf16, #tpu.memory_space<vmem>>, vector<1x256xbf16>
    %20 = arith.extf %19 : vector<1x256xbf16> to vector<1x256xf32>
    %21 = vector.broadcast %20 : vector<1x256xf32> to vector<16x256xf32>
    %22 = arith.mulf %18, %21 : vector<16x256xf32>
    %23 = arith.truncf %22 : vector<16x256xf32> to vector<16x256xbf16>
    %c48 = arith.constant 48 : index
    %c0_10 = arith.constant 0 : index
    %24 = vector.load %arg7[%c48, %c0_10] : memref<272x256xbf16, #tpu.memory_space<vmem>>, vector<16x256xbf16>
    tpu.vector_store %arg7[%c48, %c0_10], %23 {strides = array<i32>} : memref<272x256xbf16, #tpu.memory_space<vmem>>, vector<16x256xbf16>,
    %c255_i32 = arith.constant 255 : i32
    %25 = tpu.dynamic_rotate %1 by %c255_i32 dim 1 : vector<16x256xf32>, i32 -> vector<16x256xf32>
    %c3 = arith.constant 3 : index
    %c0_11 = arith.constant 0 : index
    %26 = vector.load %arg2[%c3, %c0_11] : memref<16x256xbf16, #tpu.memory_space<vmem>>, vector<1x256xbf16>
    %27 = arith.extf %26 : vector<1x256xbf16> to vector<1x256xf32>
    %28 = vector.broadcast %27 : vector<1x256xf32> to vector<16x256xf32>
    %29 = arith.mulf %25, %28 : vector<16x256xf32>
    %30 = arith.truncf %29 : vector<16x256xf32> to vector<16x256xbf16>
    %c64 = arith.constant 64 : index
    %c0_12 = arith.constant 0 : index
    %31 = vector.load %arg7[%c64, %c0_12] : memref<272x256xbf16, #tpu.memory_space<vmem>>, vector<16x256xbf16>
    tpu.vector_store %arg7[%c64, %c0_12], %30 {strides = array<i32>} : memref<272x256xbf16, #tpu.memory_space<vmem>>, vector<16x256xbf16>,
    %c239_i32 = arith.constant 239 : i32
    %32 = tpu.dynamic_rotate %1 by %c239_i32 dim 1 : vector<16x256xf32>, i32 -> vector<16x256xf32>
    %c4 = arith.constant 4 : index
    %c0_13 = arith.constant 0 : index
    %33 = vector.load %arg2[%c4, %c0_13] : memref<16x256xbf16, #tpu.memory_space<vmem>>, vector<1x256xbf16>
    %34 = arith.extf %33 : vector<1x256xbf16> to vector<1x256xf32>
    %35 = vector.broadcast %34 : vector<1x256xf32> to vector<16x256xf32>
    %36 = arith.mulf %32, %35 : vector<16x256xf32>
    %37 = arith.truncf %36 : vector<16x256xf32> to vector<16x256xbf16>
    %c80 = arith.constant 80 : index
    %c0_14 = arith.constant 0 : index
    %38 = vector.load %arg7[%c80, %c0_14] : memref<272x256xbf16, #tpu.memory_space<vmem>>, vector<16x256xbf16>
    tpu.vector_store %arg7[%c80, %c0_14], %37 {strides = array<i32>} : memref<272x256xbf16, #tpu.memory_space<vmem>>, vector<16x256xbf16>,
    %c240_i32 = arith.constant 240 : i32
    %39 = tpu.dynamic_rotate %1 by %c240_i32 dim 1 : vector<16x256xf32>, i32 -> vector<16x256xf32>
    %c5 = arith.constant 5 : index
    %c0_15 = arith.constant 0 : index
    %40 = vector.load %arg2[%c5, %c0_15] : memref<16x256xbf16, #tpu.memory_space<vmem>>, vector<1x256xbf16>
    %41 = arith.extf %40 : vector<1x256xbf16> to vector<1x256xf32>
    %42 = vector.broadcast %41 : vector<1x256xf32> to vector<16x256xf32>
    %43 = arith.mulf %39, %42 : vector<16x256xf32>
    %44 = arith.truncf %43 : vector<16x256xf32> to vector<16x256xbf16>
    %c96 = arith.constant 96 : index
    %c0_16 = arith.constant 0 : index
    %45 = vector.load %arg7[%c96, %c0_16] : memref<272x256xbf16, #tpu.memory_space<vmem>>, vector<16x256xbf16>
    tpu.vector_store %arg7[%c96, %c0_16], %44 {strides = array<i32>} : memref<272x256xbf16, #tpu.memory_space<vmem>>, vector<16x256xbf16>,
    %c241_i32 = arith.constant 241 : i32
    %46 = tpu.dynamic_rotate %1 by %c241_i32 dim 1 : vector<16x256xf32>, i32 -> vector<16x256xf32>
    %c6 = arith.constant 6 : index
    %c0_17 = arith.constant 0 : index
    %47 = vector.load %arg2[%c6, %c0_17] : memref<16x256xbf16, #tpu.memory_space<vmem>>, vector<1x256xbf16>
    %48 = arith.extf %47 : vector<1x256xbf16> to vector<1x256xf32>
    %49 = vector.broadcast %48 : vector<1x256xf32> to vector<16x256xf32>
    %50 = arith.mulf %46, %49 : vector<16x256xf32>
    %51 = arith.truncf %50 : vector<16x256xf32> to vector<16x256xbf16>
    %c112 = arith.constant 112 : index
    %c0_18 = arith.constant 0 : index
    %52 = vector.load %arg7[%c112, %c0_18] : memref<272x256xbf16, #tpu.memory_space<vmem>>, vector<16x256xbf16>
    tpu.vector_store %arg7[%c112, %c0_18], %51 {strides = array<i32>} : memref<272x256xbf16, #tpu.memory_space<vmem>>, vector<16x256xbf16>,
    %c1_i32 = arith.constant 1 : i32
    %53 = tpu.dynamic_rotate %1 by %c1_i32 dim 1 : vector<16x256xf32>, i32 -> vector<16x256xf32>
    %c7 = arith.constant 7 : index
    %c0_19 = arith.constant 0 : index
    %54 = vector.load %arg2[%c7, %c0_19] : memref<16x256xbf16, #tpu.memory_space<vmem>>, vector<1x256xbf16>
    %55 = arith.extf %54 : vector<1x256xbf16> to vector<1x256xf32>
    %56 = vector.broadcast %55 : vector<1x256xf32> to vector<16x256xf32>
    %57 = arith.mulf %53, %56 : vector<16x256xf32>
    %58 = arith.truncf %57 : vector<16x256xf32> to vector<16x256xbf16>
    %c128 = arith.constant 128 : index
    %c0_20 = arith.constant 0 : index
    %59 = vector.load %arg7[%c128, %c0_20] : memref<272x256xbf16, #tpu.memory_space<vmem>>, vector<16x256xbf16>
    tpu.vector_store %arg7[%c128, %c0_20], %58 {strides = array<i32>} : memref<272x256xbf16, #tpu.memory_space<vmem>>, vector<16x256xbf16>,
    %c34_i32 = arith.constant 34 : i32
    %60 = tpu.dynamic_rotate %1 by %c34_i32 dim 1 : vector<16x256xf32>, i32 -> vector<16x256xf32>
    %c8 = arith.constant 8 : index
    %c0_21 = arith.constant 0 : index
    %61 = vector.load %arg2[%c8, %c0_21] : memref<16x256xbf16, #tpu.memory_space<vmem>>, vector<1x256xbf16>
    %62 = arith.extf %61 : vector<1x256xbf16> to vector<1x256xf32>
    %63 = vector.broadcast %62 : vector<1x256xf32> to vector<16x256xf32>
    %64 = arith.mulf %60, %63 : vector<16x256xf32>
    %65 = arith.truncf %64 : vector<16x256xf32> to vector<16x256xbf16>
    %c144 = arith.constant 144 : index
    %c0_22 = arith.constant 0 : index
    %66 = vector.load %arg7[%c144, %c0_22] : memref<272x256xbf16, #tpu.memory_space<vmem>>, vector<16x256xbf16>
    tpu.vector_store %arg7[%c144, %c0_22], %65 {strides = array<i32>} : memref<272x256xbf16, #tpu.memory_space<vmem>>, vector<16x256xbf16>,
    %c32_i32 = arith.constant 32 : i32
    %67 = tpu.dynamic_rotate %1 by %c32_i32 dim 1 : vector<16x256xf32>, i32 -> vector<16x256xf32>
    %c9 = arith.constant 9 : index
    %c0_23 = arith.constant 0 : index
    %68 = vector.load %arg2[%c9, %c0_23] : memref<16x256xbf16, #tpu.memory_space<vmem>>, vector<1x256xbf16>
    %69 = arith.extf %68 : vector<1x256xbf16> to vector<1x256xf32>
    %70 = vector.broadcast %69 : vector<1x256xf32> to vector<16x256xf32>
    %71 = arith.mulf %67, %70 : vector<16x256xf32>
    %72 = arith.truncf %71 : vector<16x256xf32> to vector<16x256xbf16>
    %c160 = arith.constant 160 : index
    %c0_24 = arith.constant 0 : index
    %73 = vector.load %arg7[%c160, %c0_24] : memref<272x256xbf16, #tpu.memory_space<vmem>>, vector<16x256xbf16>
    tpu.vector_store %arg7[%c160, %c0_24], %72 {strides = array<i32>} : memref<272x256xbf16, #tpu.memory_space<vmem>>, vector<16x256xbf16>,
    %c30_i32 = arith.constant 30 : i32
    %74 = tpu.dynamic_rotate %1 by %c30_i32 dim 1 : vector<16x256xf32>, i32 -> vector<16x256xf32>
    %c10 = arith.constant 10 : index
    %c0_25 = arith.constant 0 : index
    %75 = vector.load %arg2[%c10, %c0_25] : memref<16x256xbf16, #tpu.memory_space<vmem>>, vector<1x256xbf16>
    %76 = arith.extf %75 : vector<1x256xbf16> to vector<1x256xf32>
    %77 = vector.broadcast %76 : vector<1x256xf32> to vector<16x256xf32>
    %78 = arith.mulf %74, %77 : vector<16x256xf32>
    %79 = arith.truncf %78 : vector<16x256xf32> to vector<16x256xbf16>
    %c176 = arith.constant 176 : index
    %c0_26 = arith.constant 0 : index
    %80 = vector.load %arg7[%c176, %c0_26] : memref<272x256xbf16, #tpu.memory_space<vmem>>, vector<16x256xbf16>
    tpu.vector_store %arg7[%c176, %c0_26], %79 {strides = array<i32>} : memref<272x256xbf16, #tpu.memory_space<vmem>>, vector<16x256xbf16>,
    %c254_i32 = arith.constant 254 : i32
    %81 = tpu.dynamic_rotate %1 by %c254_i32 dim 1 : vector<16x256xf32>, i32 -> vector<16x256xf32>
    %c11 = arith.constant 11 : index
    %c0_27 = arith.constant 0 : index
    %82 = vector.load %arg2[%c11, %c0_27] : memref<16x256xbf16, #tpu.memory_space<vmem>>, vector<1x256xbf16>
    %83 = arith.extf %82 : vector<1x256xbf16> to vector<1x256xf32>
    %84 = vector.broadcast %83 : vector<1x256xf32> to vector<16x256xf32>
    %85 = arith.mulf %81, %84 : vector<16x256xf32>
    %86 = arith.truncf %85 : vector<16x256xf32> to vector<16x256xbf16>
    %c192 = arith.constant 192 : index
    %c0_28 = arith.constant 0 : index
    %87 = vector.load %arg7[%c192, %c0_28] : memref<272x256xbf16, #tpu.memory_space<vmem>>, vector<16x256xbf16>
    tpu.vector_store %arg7[%c192, %c0_28], %86 {strides = array<i32>} : memref<272x256xbf16, #tpu.memory_space<vmem>>, vector<16x256xbf16>,
    %c222_i32 = arith.constant 222 : i32
    %88 = tpu.dynamic_rotate %1 by %c222_i32 dim 1 : vector<16x256xf32>, i32 -> vector<16x256xf32>
    %c12 = arith.constant 12 : index
    %c0_29 = arith.constant 0 : index
    %89 = vector.load %arg2[%c12, %c0_29] : memref<16x256xbf16, #tpu.memory_space<vmem>>, vector<1x256xbf16>
    %90 = arith.extf %89 : vector<1x256xbf16> to vector<1x256xf32>
    %91 = vector.broadcast %90 : vector<1x256xf32> to vector<16x256xf32>
    %92 = arith.mulf %88, %91 : vector<16x256xf32>
    %93 = arith.truncf %92 : vector<16x256xf32> to vector<16x256xbf16>
    %c208 = arith.constant 208 : index
    %c0_30 = arith.constant 0 : index
    %94 = vector.load %arg7[%c208, %c0_30] : memref<272x256xbf16, #tpu.memory_space<vmem>>, vector<16x256xbf16>
    tpu.vector_store %arg7[%c208, %c0_30], %93 {strides = array<i32>} : memref<272x256xbf16, #tpu.memory_space<vmem>>, vector<16x256xbf16>,
    %c224_i32 = arith.constant 224 : i32
    %95 = tpu.dynamic_rotate %1 by %c224_i32 dim 1 : vector<16x256xf32>, i32 -> vector<16x256xf32>
    %c13 = arith.constant 13 : index
    %c0_31 = arith.constant 0 : index
    %96 = vector.load %arg2[%c13, %c0_31] : memref<16x256xbf16, #tpu.memory_space<vmem>>, vector<1x256xbf16>
    %97 = arith.extf %96 : vector<1x256xbf16> to vector<1x256xf32>
    %98 = vector.broadcast %97 : vector<1x256xf32> to vector<16x256xf32>
    %99 = arith.mulf %95, %98 : vector<16x256xf32>
    %100 = arith.truncf %99 : vector<16x256xf32> to vector<16x256xbf16>
    %c224 = arith.constant 224 : index
    %c0_32 = arith.constant 0 : index
    %101 = vector.load %arg7[%c224, %c0_32] : memref<272x256xbf16, #tpu.memory_space<vmem>>, vector<16x256xbf16>
    tpu.vector_store %arg7[%c224, %c0_32], %100 {strides = array<i32>} : memref<272x256xbf16, #tpu.memory_space<vmem>>, vector<16x256xbf16>,
    %c226_i32 = arith.constant 226 : i32
    %102 = tpu.dynamic_rotate %1 by %c226_i32 dim 1 : vector<16x256xf32>, i32 -> vector<16x256xf32>
    %c14 = arith.constant 14 : index
    %c0_33 = arith.constant 0 : index
    %103 = vector.load %arg2[%c14, %c0_33] : memref<16x256xbf16, #tpu.memory_space<vmem>>, vector<1x256xbf16>
    %104 = arith.extf %103 : vector<1x256xbf16> to vector<1x256xf32>
    %105 = vector.broadcast %104 : vector<1x256xf32> to vector<16x256xf32>
    %106 = arith.mulf %102, %105 : vector<16x256xf32>
    %107 = arith.truncf %106 : vector<16x256xf32> to vector<16x256xbf16>
    %c240 = arith.constant 240 : index
    %c0_34 = arith.constant 0 : index
    %108 = vector.load %arg7[%c240, %c0_34] : memref<272x256xbf16, #tpu.memory_space<vmem>>, vector<16x256xbf16>
    tpu.vector_store %arg7[%c240, %c0_34], %107 {strides = array<i32>} : memref<272x256xbf16, #tpu.memory_space<vmem>>, vector<16x256xbf16>,
    %c2_i32 = arith.constant 2 : i32
    %109 = tpu.dynamic_rotate %1 by %c2_i32 dim 1 : vector<16x256xf32>, i32 -> vector<16x256xf32>
    %c15 = arith.constant 15 : index
    %c0_35 = arith.constant 0 : index
    %110 = vector.load %arg2[%c15, %c0_35] : memref<16x256xbf16, #tpu.memory_space<vmem>>, vector<1x256xbf16>
    %111 = arith.extf %110 : vector<1x256xbf16> to vector<1x256xf32>
    %112 = vector.broadcast %111 : vector<1x256xf32> to vector<16x256xf32>
    %113 = arith.mulf %109, %112 : vector<16x256xf32>
    %114 = arith.truncf %113 : vector<16x256xf32> to vector<16x256xbf16>
    %c256 = arith.constant 256 : index
    %c0_36 = arith.constant 0 : index
    %115 = vector.load %arg7[%c256, %c0_36] : memref<272x256xbf16, #tpu.memory_space<vmem>>, vector<16x256xbf16>
    tpu.vector_store %arg7[%c256, %c0_36], %114 {strides = array<i32>} : memref<272x256xbf16, #tpu.memory_space<vmem>>, vector<16x256xbf16>,
    %c0_37 = arith.constant 0 : index
    %c0_38 = arith.constant 0 : index
    %116 = vector.load %arg3[%c0_37, %c0_38] : memref<80x272xbf16, #tpu.memory_space<vmem>>, vector<80x272xbf16>
    %c0_39 = arith.constant 0 : index
    %c0_40 = arith.constant 0 : index
    %117 = vector.load %arg7[%c0_39, %c0_40] : memref<272x256xbf16, #tpu.memory_space<vmem>>, vector<272x256xbf16>
    %cst = arith.constant dense<0.000000e+00> : vector<80x256xf32>
    %118 = tpu.matmul %116, %117, %cst {dimension_numbers = #tpu.dot_dimension_numbers<[1], [0], [0], [1], [0, 0, 1, 1], [], []>} : vector<80x272xbf16>, vector<272x256xbf16>, vector<80x256xf32> -> vector<80x256xf32>
    %c0_41 = arith.constant 0 : index
    %c0_42 = arith.constant 0 : index
    %119 = vector.load %arg8[%c0_41, %c0_42] : memref<80x256xf32, #tpu.memory_space<vmem>>, vector<80x256xf32>
    tpu.vector_store %arg8[%c0_41, %c0_42], %118 {strides = array<i32>} : memref<80x256xf32, #tpu.memory_space<vmem>>, vector<80x256xf32>,
    %c0_43 = arith.constant 0 : index
    %c0_44 = arith.constant 0 : index
    %120 = vector.load %arg8[%c0_43, %c0_44] : memref<80x256xf32, #tpu.memory_space<vmem>>, vector<8x256xf32>
    %c8_45 = arith.constant 8 : index
    %c0_46 = arith.constant 0 : index
    %121 = vector.load %arg8[%c8_45, %c0_46] : memref<80x256xf32, #tpu.memory_space<vmem>>, vector<16x256xf32>
    %c24 = arith.constant 24 : index
    %c0_47 = arith.constant 0 : index
    %122 = vector.load %arg8[%c24, %c0_47] : memref<80x256xf32, #tpu.memory_space<vmem>>, vector<16x256xf32>
    %123 = arith.mulf %120, %120 : vector<8x256xf32>
    %cst_48 = arith.constant dense<0.000000e+00> : vector<8xf32>
    %124 = vector.multi_reduction <add>, %123, %cst_48 [1] : vector<8x256xf32> to vector<8xf32>
    %125 = vector.shape_cast %124 : vector<8xf32> to vector<8x1xf32>
    %126 = math.sqrt %125 : vector<8x1xf32>
    %cst_49 = arith.constant 9.99999996E-13 : f32
    %127 = vector.broadcast %cst_49 : f32 to vector<8x1xf32>
    %128 = arith.maximumf %126, %127 : vector<8x1xf32>
    %cst_50 = arith.constant 1.000000e+00 : f32
    %129 = vector.broadcast %cst_50 : f32 to vector<8x1xf32>
    %130 = arith.divf %129, %128 : vector<8x1xf32>
    %131 = arith.mulf %121, %121 : vector<16x256xf32>
    %cst_51 = arith.constant dense<0.000000e+00> : vector<16xf32>
    %132 = vector.multi_reduction <add>, %131, %cst_51 [1] : vector<16x256xf32> to vector<16xf32>
    %133 = vector.shape_cast %132 : vector<16xf32> to vector<16x1xf32>
    %134 = math.sqrt %133 : vector<16x1xf32>
    %cst_52 = arith.constant 9.99999996E-13 : f32
    %135 = vector.broadcast %cst_52 : f32 to vector<16x1xf32>
    %136 = arith.maximumf %134, %135 : vector<16x1xf32>
    %cst_53 = arith.constant 1.000000e+00 : f32
    %137 = vector.broadcast %cst_53 : f32 to vector<16x1xf32>
    %138 = arith.divf %137, %136 : vector<16x1xf32>
    %139 = vector.broadcast %130 : vector<8x1xf32> to vector<8x256xf32>
    %140 = arith.mulf %120, %139 : vector<8x256xf32>
    %141 = arith.truncf %140 : vector<8x256xf32> to vector<8x256xbf16>
    %142 = arith.truncf %121 : vector<16x256xf32> to vector<16x256xbf16>
    %cst_54 = arith.constant dense<0.000000e+00> : vector<16x8xf32>
    %143 = tpu.matmul %142, %141, %cst_54 {dimension_numbers = #tpu.dot_dimension_numbers<[1], [1], [0], [0], [0, 0, 1, 0], [], []>} : vector<16x256xbf16>, vector<8x256xbf16>, vector<16x8xf32> -> vector<16x8xf32>
    %cst_55 = arith.constant 6.250000e-02 : f32
    %144 = vector.broadcast %cst_55 : f32 to vector<16x1xf32>
    %145 = arith.mulf %138, %144 : vector<16x1xf32>
    %146 = vector.broadcast %145 : vector<16x1xf32> to vector<16x8xf32>
    %147 = arith.mulf %143, %146 : vector<16x8xf32>
    %148 = tpu.iota {dimensions = array<i32: 1>} : vector<1x8xi32>
    %c2_i32_56 = arith.constant 2 : i32
    %149 = vector.broadcast %c2_i32_56 : i32 to vector<1x8xi32>
    %150 = arith.cmpi slt, %148, %149 : vector<1x8xi32>
    %151 = arith.extui %150 : vector<1x8xi1> to vector<1x8xi32>
    %152 = arith.sitofp %151 : vector<1x8xi32> to vector<1x8xf32>
    %153 = vector.broadcast %152 : vector<1x8xf32> to vector<16x8xf32>
    %154 = arith.mulf %147, %153 : vector<16x8xf32>
    %155 = vector.shape_cast %154 : vector<16x8xf32> to vector<1x16x8xf32>
    %cst_57 = arith.constant dense<0.000000e+00> : vector<1xf32>
    %156 = vector.multi_reduction <add>, %155, %cst_57 [1, 2] : vector<1x16x8xf32> to vector<1xf32>
    %157 = vector.shape_cast %156 : vector<1xf32> to vector<1x1x1xf32>
    %158 = vector.extract %157[0, 0, 0] : f32 from vector<1x1x1xf32>
    %cst_58 = arith.constant 3.200000e+01 : f32
    %159 = arith.divf %158, %cst_58 : f32
    %160 = vector.broadcast %159 : f32 to vector<16x8xf32>
    %161 = arith.subf %147, %160 : vector<16x8xf32>
    %162 = vector.broadcast %152 : vector<1x8xf32> to vector<16x8xf32>
    %163 = arith.mulf %161, %162 : vector<16x8xf32>
    %164 = arith.mulf %163, %163 : vector<16x8xf32>
    %165 = vector.shape_cast %164 : vector<16x8xf32> to vector<1x16x8xf32>
    %cst_59 = arith.constant dense<0.000000e+00> : vector<1xf32>
    %166 = vector.multi_reduction <add>, %165, %cst_59 [1, 2] : vector<1x16x8xf32> to vector<1xf32>
    %167 = vector.shape_cast %166 : vector<1xf32> to vector<1x1x1xf32>
    %168 = vector.extract %167[0, 0, 0] : f32 from vector<1x1x1xf32>
    %cst_60 = arith.constant 3.200000e+01 : f32
    %169 = arith.divf %168, %cst_60 : f32
    %170 = vector.broadcast %159 : f32 to vector<16x8xf32>
    %171 = arith.subf %147, %170 : vector<16x8xf32>
    %cst_61 = arith.constant 9.99999974E-6 : f32
    %172 = arith.addf %169, %cst_61 : f32
    %173 = math.rsqrt %172 : f32
    %174 = vector.broadcast %173 : f32 to vector<16x8xf32>
    %175 = arith.mulf %171, %174 : vector<16x8xf32>
    %cst_62 = arith.constant dense<0xFF800000> : vector<8xf32>
    %176 = vector.multi_reduction <maximumf>, %175, %cst_62 [0] : vector<16x8xf32> to vector<8xf32>
    %177 = vector.shape_cast %176 : vector<8xf32> to vector<1x8xf32>
    %178 = vector.broadcast %177 : vector<1x8xf32> to vector<16x8xf32>
    %179 = arith.subf %175, %178 : vector<16x8xf32>
    %180 = math.exp %179 : vector<16x8xf32>
    %cst_63 = arith.constant dense<0.000000e+00> : vector<8xf32>
    %181 = vector.multi_reduction <add>, %180, %cst_63 [0] : vector<16x8xf32> to vector<8xf32>
    %182 = vector.shape_cast %181 : vector<8xf32> to vector<1x8xf32>
    %183 = vector.broadcast %182 : vector<1x8xf32> to vector<16x8xf32>
    %184 = arith.divf %180, %183 : vector<16x8xf32>
    %185 = arith.truncf %184 : vector<16x8xf32> to vector<16x8xbf16>
    %186 = arith.truncf %122 : vector<16x256xf32> to vector<16x256xbf16>
    %cst_64 = arith.constant dense<0.000000e+00> : vector<8x256xf32>
    %187 = tpu.matmul %185, %186, %cst_64 {dimension_numbers = #tpu.dot_dimension_numbers<[0], [0], [1], [1], [0, 1, 1, 1], [], []>} : vector<16x8xbf16>, vector<16x256xbf16>, vector<8x256xf32> -> vector<8x256xf32>
    %c0_65 = arith.constant 0 : index
    %c0_66 = arith.constant 0 : index
    %188 = vector.load %arg9[%c0_65, %c0_66] : memref<16x256xf32, #tpu.memory_space<vmem>>, vector<8x256xf32>
    tpu.vector_store %arg9[%c0_65, %c0_66], %187 {strides = array<i32>} : memref<16x256xf32, #tpu.memory_space<vmem>>, vector<8x256xf32>,
    %c40 = arith.constant 40 : index
    %c0_67 = arith.constant 0 : index
    %189 = vector.load %arg8[%c40, %c0_67] : memref<80x256xf32, #tpu.memory_space<vmem>>, vector<8x256xf32>
    %c48_68 = arith.constant 48 : index
    %c0_69 = arith.constant 0 : index
    %190 = vector.load %arg8[%c48_68, %c0_69] : memref<80x256xf32, #tpu.memory_space<vmem>>, vector<16x256xf32>
    %c64_70 = arith.constant 64 : index
    %c0_71 = arith.constant 0 : index
    %191 = vector.load %arg8[%c64_70, %c0_71] : memref<80x256xf32, #tpu.memory_space<vmem>>, vector<16x256xf32>
    %192 = arith.mulf %189, %189 : vector<8x256xf32>
    %cst_72 = arith.constant dense<0.000000e+00> : vector<8xf32>
    %193 = vector.multi_reduction <add>, %192, %cst_72 [1] : vector<8x256xf32> to vector<8xf32>
    %194 = vector.shape_cast %193 : vector<8xf32> to vector<8x1xf32>
    %195 = math.sqrt %194 : vector<8x1xf32>
    %cst_73 = arith.constant 9.99999996E-13 : f32
    %196 = vector.broadcast %cst_73 : f32 to vector<8x1xf32>
    %197 = arith.maximumf %195, %196 : vector<8x1xf32>
    %cst_74 = arith.constant 1.000000e+00 : f32
    %198 = vector.broadcast %cst_74 : f32 to vector<8x1xf32>
    %199 = arith.divf %198, %197 : vector<8x1xf32>
    %200 = arith.mulf %190, %190 : vector<16x256xf32>
    %cst_75 = arith.constant dense<0.000000e+00> : vector<16xf32>
    %201 = vector.multi_reduction <add>, %200, %cst_75 [1] : vector<16x256xf32> to vector<16xf32>
    %202 = vector.shape_cast %201 : vector<16xf32> to vector<16x1xf32>
    %203 = math.sqrt %202 : vector<16x1xf32>
    %cst_76 = arith.constant 9.99999996E-13 : f32
    %204 = vector.broadcast %cst_76 : f32 to vector<16x1xf32>
    %205 = arith.maximumf %203, %204 : vector<16x1xf32>
    %cst_77 = arith.constant 1.000000e+00 : f32
    %206 = vector.broadcast %cst_77 : f32 to vector<16x1xf32>
    %207 = arith.divf %206, %205 : vector<16x1xf32>
    %208 = vector.broadcast %199 : vector<8x1xf32> to vector<8x256xf32>
    %209 = arith.mulf %189, %208 : vector<8x256xf32>
    %210 = arith.truncf %209 : vector<8x256xf32> to vector<8x256xbf16>
    %211 = arith.truncf %190 : vector<16x256xf32> to vector<16x256xbf16>
    %cst_78 = arith.constant dense<0.000000e+00> : vector<16x8xf32>
    %212 = tpu.matmul %211, %210, %cst_78 {dimension_numbers = #tpu.dot_dimension_numbers<[1], [1], [0], [0], [0, 0, 1, 0], [], []>} : vector<16x256xbf16>, vector<8x256xbf16>, vector<16x8xf32> -> vector<16x8xf32>
    %cst_79 = arith.constant 6.250000e-02 : f32
    %213 = vector.broadcast %cst_79 : f32 to vector<16x1xf32>
    %214 = arith.mulf %207, %213 : vector<16x1xf32>
    %215 = vector.broadcast %214 : vector<16x1xf32> to vector<16x8xf32>
    %216 = arith.mulf %212, %215 : vector<16x8xf32>
    %217 = tpu.iota {dimensions = array<i32: 1>} : vector<1x8xi32>
    %c2_i32_80 = arith.constant 2 : i32
    %218 = vector.broadcast %c2_i32_80 : i32 to vector<1x8xi32>
    %219 = arith.cmpi slt, %217, %218 : vector<1x8xi32>
    %220 = arith.extui %219 : vector<1x8xi1> to vector<1x8xi32>
    %221 = arith.sitofp %220 : vector<1x8xi32> to vector<1x8xf32>
    %222 = vector.broadcast %221 : vector<1x8xf32> to vector<16x8xf32>
    %223 = arith.mulf %216, %222 : vector<16x8xf32>
    %224 = vector.shape_cast %223 : vector<16x8xf32> to vector<1x16x8xf32>
    %cst_81 = arith.constant dense<0.000000e+00> : vector<1xf32>
    %225 = vector.multi_reduction <add>, %224, %cst_81 [1, 2] : vector<1x16x8xf32> to vector<1xf32>
    %226 = vector.shape_cast %225 : vector<1xf32> to vector<1x1x1xf32>
    %227 = vector.extract %226[0, 0, 0] : f32 from vector<1x1x1xf32>
    %cst_82 = arith.constant 3.200000e+01 : f32
    %228 = arith.divf %227, %cst_82 : f32
    %229 = vector.broadcast %228 : f32 to vector<16x8xf32>
    %230 = arith.subf %216, %229 : vector<16x8xf32>
    %231 = vector.broadcast %221 : vector<1x8xf32> to vector<16x8xf32>
    %232 = arith.mulf %230, %231 : vector<16x8xf32>
    %233 = arith.mulf %232, %232 : vector<16x8xf32>
    %234 = vector.shape_cast %233 : vector<16x8xf32> to vector<1x16x8xf32>
    %cst_83 = arith.constant dense<0.000000e+00> : vector<1xf32>
    %235 = vector.multi_reduction <add>, %234, %cst_83 [1, 2] : vector<1x16x8xf32> to vector<1xf32>
    %236 = vector.shape_cast %235 : vector<1xf32> to vector<1x1x1xf32>
    %237 = vector.extract %236[0, 0, 0] : f32 from vector<1x1x1xf32>
    %cst_84 = arith.constant 3.200000e+01 : f32
    %238 = arith.divf %237, %cst_84 : f32
    %239 = vector.broadcast %228 : f32 to vector<16x8xf32>
    %240 = arith.subf %216, %239 : vector<16x8xf32>
    %cst_85 = arith.constant 9.99999974E-6 : f32
    %241 = arith.addf %238, %cst_85 : f32
    %242 = math.rsqrt %241 : f32
    %243 = vector.broadcast %242 : f32 to vector<16x8xf32>
    %244 = arith.mulf %240, %243 : vector<16x8xf32>
    %cst_86 = arith.constant dense<0xFF800000> : vector<8xf32>
    %245 = vector.multi_reduction <maximumf>, %244, %cst_86 [0] : vector<16x8xf32> to vector<8xf32>
    %246 = vector.shape_cast %245 : vector<8xf32> to vector<1x8xf32>
    %247 = vector.broadcast %246 : vector<1x8xf32> to vector<16x8xf32>
    %248 = arith.subf %244, %247 : vector<16x8xf32>
    %249 = math.exp %248 : vector<16x8xf32>
    %cst_87 = arith.constant dense<0.000000e+00> : vector<8xf32>
    %250 = vector.multi_reduction <add>, %249, %cst_87 [0] : vector<16x8xf32> to vector<8xf32>
    %251 = vector.shape_cast %250 : vector<8xf32> to vector<1x8xf32>
    %252 = vector.broadcast %251 : vector<1x8xf32> to vector<16x8xf32>
    %253 = arith.divf %249, %252 : vector<16x8xf32>
    %254 = arith.truncf %253 : vector<16x8xf32> to vector<16x8xbf16>
    %255 = arith.truncf %191 : vector<16x256xf32> to vector<16x256xbf16>
    %cst_88 = arith.constant dense<0.000000e+00> : vector<8x256xf32>
    %256 = tpu.matmul %254, %255, %cst_88 {dimension_numbers = #tpu.dot_dimension_numbers<[0], [0], [1], [1], [0, 1, 1, 1], [], []>} : vector<16x8xbf16>, vector<16x256xbf16>, vector<8x256xf32> -> vector<8x256xf32>
    %c8_89 = arith.constant 8 : index
    %c0_90 = arith.constant 0 : index
    %257 = vector.load %arg9[%c8_89, %c0_90] : memref<16x256xf32, #tpu.memory_space<vmem>>, vector<8x256xf32>
    tpu.vector_store %arg9[%c8_89, %c0_90], %256 {strides = array<i32>} : memref<16x256xf32, #tpu.memory_space<vmem>>, vector<8x256xf32>,
    %c0_91 = arith.constant 0 : index
    %c0_92 = arith.constant 0 : index
    %258 = vector.load %arg4[%c0_91, %c0_92] : memref<16x16xbf16, #tpu.memory_space<vmem>>, vector<16x16xbf16>
    %c0_93 = arith.constant 0 : index
    %c0_94 = arith.constant 0 : index
    %259 = vector.load %arg9[%c0_93, %c0_94] : memref<16x256xf32, #tpu.memory_space<vmem>>, vector<16x256xf32>
    %260 = arith.truncf %259 : vector<16x256xf32> to vector<16x256xbf16>
    %cst_95 = arith.constant dense<0.000000e+00> : vector<16x256xf32>
    %261 = tpu.matmul %258, %260, %cst_95 {dimension_numbers = #tpu.dot_dimension_numbers<[1], [0], [0], [1], [0, 0, 1, 1], [], []>} : vector<16x16xbf16>, vector<16x256xbf16>, vector<16x256xf32> -> vector<16x256xf32>
    %c0_96 = arith.constant 0 : index
    %c0_97 = arith.constant 0 : index
    %c0_98 = arith.constant 0 : index
    %262 = vector.load %arg5[%c0_96, %c0_97, %c0_98] : memref<1x16x256xf32, #tpu.memory_space<vmem>>, vector<1x16x256xf32>
    %263 = vector.shape_cast %262 : vector<1x16x256xf32> to vector<16x256xf32>
    %264 = vector.shape_cast %261 : vector<16x256xf32> to vector<1x16x256xf32>
    tpu.vector_store %arg5[%c0_96, %c0_97, %c0_98], %264 {strides = array<i32>} : memref<1x16x256xf32, #tpu.memory_space<vmem>>, vector<1x16x256xf32>,
    %cst_99 = arith.constant dense<0.000000e+00> : vector<16xf32>
    %265 = vector.multi_reduction <add>, %261, %cst_99 [1] : vector<16x256xf32> to vector<16xf32>
    %266 = vector.shape_cast %265 : vector<16xf32> to vector<16x1xf32>
    %c0_100 = arith.constant 0 : index
    %c0_101 = arith.constant 0 : index
    %c0_102 = arith.constant 0 : index
    %267 = vector.load %arg6[%c0_100, %c0_101, %c0_102] : memref<1x16x2xf32, #tpu.memory_space<vmem>>, vector<1x16x1xf32>
    %268 = vector.shape_cast %267 : vector<1x16x1xf32> to vector<16x1xf32>
    %269 = vector.shape_cast %266 : vector<16x1xf32> to vector<1x16x1xf32>
    tpu.vector_store %arg6[%c0_100, %c0_101, %c0_102], %269 {strides = array<i32>} : memref<1x16x2xf32, #tpu.memory_space<vmem>>, vector<1x16x1xf32>,
    %270 = arith.mulf %261, %261 : vector<16x256xf32>
    %cst_103 = arith.constant dense<0.000000e+00> : vector<16xf32>
    %271 = vector.multi_reduction <add>, %270, %cst_103 [1] : vector<16x256xf32> to vector<16xf32>
    %272 = vector.shape_cast %271 : vector<16xf32> to vector<16x1xf32>
    %c0_104 = arith.constant 0 : index
    %c0_105 = arith.constant 0 : index
    %c1_106 = arith.constant 1 : index
    %273 = vector.load %arg6[%c0_104, %c0_105, %c1_106] : memref<1x16x2xf32, #tpu.memory_space<vmem>>, vector<1x16x1xf32>
    %274 = vector.shape_cast %273 : vector<1x16x1xf32> to vector<16x1xf32>
    %275 = vector.shape_cast %272 : vector<16x1xf32> to vector<1x16x1xf32>
    tpu.vector_store %arg6[%c0_104, %c0_105, %c1_106], %275 {strides = array<i32>} : memref<1x16x2xf32, #tpu.memory_space<vmem>>, vector<1x16x1xf32>,
    return
  }
  func.func @transform_0(%arg0: i32) -> (i32, i32, i32) {
    %c0_i32 = arith.constant 0 : i32
    %c0_i32_0 = arith.constant 0 : i32
    %c0_i32_1 = arith.constant 0 : i32
    return %arg0, %c0_i32, %c0_i32_0 : i32, i32, i32
  }
  func.func @transform_1(%arg0: i32) -> (i32, i32) {
    %c0_i32 = arith.constant 0 : i32
    %c0_i32_0 = arith.constant 0 : i32
    %c0_i32_1 = arith.constant 0 : i32
    return %c0_i32, %c0_i32_0 : i32, i32
  }
  func.func @transform_2(%arg0: i32) -> (i32, i32) {
    %c0_i32 = arith.constant 0 : i32
    %c0_i32_0 = arith.constant 0 : i32
    %c0_i32_1 = arith.constant 0 : i32
    return %c0_i32, %c0_i32_0 : i32, i32
  }
  func.func @transform_3(%arg0: i32) -> (i32, i32) {
    %c0_i32 = arith.constant 0 : i32
    %c0_i32_0 = arith.constant 0 : i32
    %c0_i32_1 = arith.constant 0 : i32
    return %c0_i32, %c0_i32_0 : i32, i32
  }
  func.func @transform_4(%arg0: i32) -> (i32, i32, i32) {
    %c0_i32 = arith.constant 0 : i32
    %c0_i32_0 = arith.constant 0 : i32
    %c0_i32_1 = arith.constant 0 : i32
    return %arg0, %c0_i32, %c0_i32_0 : i32, i32, i32
  }
  func.func @transform_5(%arg0: i32) -> (i32, i32, i32) {
    %c0_i32 = arith.constant 0 : i32
    %c0_i32_0 = arith.constant 0 : i32
    %c0_i32_1 = arith.constant 0 : i32
    return %arg0, %c0_i32, %c0_i32_0 : i32, i32, i32
  }
}

module attributes {stable_mosaic.version = 11 : i64} {
  func.func @_bn_relu_kernel(%arg0: i32, %arg1: memref<2x16x256xf32, #tpu.memory_space<vmem>>, %arg2: memref<16x2xf32, #tpu.memory_space<vmem>>, %arg3: memref<2x16x256xf32, #tpu.memory_space<vmem>>) attributes {dimension_semantics = [#tpu.dimension_semantics<parallel>], iteration_bounds = array<i64: 1>, scalar_prefetch = 0 : i64, scratch_operands = 0 : i64, tpu.core_type = #tpu.core_type<tc>, window_params = [{transform_indices = @transform_0, window_bounds = array<i64: 2, 16, 256>}, {pipeline_mode = #tpu.pipeline_mode<synchronous>, transform_indices = @transform_1, window_bounds = array<i64: 16, 2>}, {transform_indices = @transform_2, window_bounds = array<i64: 2, 16, 256>}]} {
    %c0 = arith.constant 0 : index
    %c0_0 = arith.constant 0 : index
    %0 = vector.load %arg2[%c0, %c0_0] : memref<16x2xf32, #tpu.memory_space<vmem>>, vector<16x1xf32>
    %c0_1 = arith.constant 0 : index
    %c1 = arith.constant 1 : index
    %1 = vector.load %arg2[%c0_1, %c1] : memref<16x2xf32, #tpu.memory_space<vmem>>, vector<16x1xf32>
    %c0_2 = arith.constant 0 : index
    %c0_3 = arith.constant 0 : index
    %c0_4 = arith.constant 0 : index
    %2 = vector.load %arg1[%c0_2, %c0_3, %c0_4] : memref<2x16x256xf32, #tpu.memory_space<vmem>>, vector<1x16x256xf32>
    %3 = vector.shape_cast %2 : vector<1x16x256xf32> to vector<16x256xf32>
    %4 = vector.broadcast %0 : vector<16x1xf32> to vector<16x256xf32>
    %5 = arith.mulf %3, %4 : vector<16x256xf32>
    %6 = vector.broadcast %1 : vector<16x1xf32> to vector<16x256xf32>
    %7 = arith.addf %5, %6 : vector<16x256xf32>
    %cst = arith.constant 0.000000e+00 : f32
    %8 = vector.broadcast %cst : f32 to vector<16x256xf32>
    %9 = arith.maximumf %7, %8 : vector<16x256xf32>
    %c0_5 = arith.constant 0 : index
    %c0_6 = arith.constant 0 : index
    %c0_7 = arith.constant 0 : index
    %10 = vector.load %arg3[%c0_5, %c0_6, %c0_7] : memref<2x16x256xf32, #tpu.memory_space<vmem>>, vector<1x16x256xf32>
    %11 = vector.shape_cast %10 : vector<1x16x256xf32> to vector<16x256xf32>
    %12 = vector.shape_cast %9 : vector<16x256xf32> to vector<1x16x256xf32>
    tpu.vector_store %arg3[%c0_5, %c0_6, %c0_7], %12 {strides = array<i32>} : memref<2x16x256xf32, #tpu.memory_space<vmem>>, vector<1x16x256xf32>,
    %c1_8 = arith.constant 1 : index
    %c0_9 = arith.constant 0 : index
    %c0_10 = arith.constant 0 : index
    %13 = vector.load %arg1[%c1_8, %c0_9, %c0_10] : memref<2x16x256xf32, #tpu.memory_space<vmem>>, vector<1x16x256xf32>
    %14 = vector.shape_cast %13 : vector<1x16x256xf32> to vector<16x256xf32>
    %15 = vector.broadcast %0 : vector<16x1xf32> to vector<16x256xf32>
    %16 = arith.mulf %14, %15 : vector<16x256xf32>
    %17 = vector.broadcast %1 : vector<16x1xf32> to vector<16x256xf32>
    %18 = arith.addf %16, %17 : vector<16x256xf32>
    %cst_11 = arith.constant 0.000000e+00 : f32
    %19 = vector.broadcast %cst_11 : f32 to vector<16x256xf32>
    %20 = arith.maximumf %18, %19 : vector<16x256xf32>
    %c1_12 = arith.constant 1 : index
    %c0_13 = arith.constant 0 : index
    %c0_14 = arith.constant 0 : index
    %21 = vector.load %arg3[%c1_12, %c0_13, %c0_14] : memref<2x16x256xf32, #tpu.memory_space<vmem>>, vector<1x16x256xf32>
    %22 = vector.shape_cast %21 : vector<1x16x256xf32> to vector<16x256xf32>
    %23 = vector.shape_cast %20 : vector<16x256xf32> to vector<1x16x256xf32>
    tpu.vector_store %arg3[%c1_12, %c0_13, %c0_14], %23 {strides = array<i32>} : memref<2x16x256xf32, #tpu.memory_space<vmem>>, vector<1x16x256xf32>,
    return
  }
  func.func @transform_0(%arg0: i32) -> (i32, i32, i32) {
    %c0_i32 = arith.constant 0 : i32
    %c0_i32_0 = arith.constant 0 : i32
    %c0_i32_1 = arith.constant 0 : i32
    return %arg0, %c0_i32, %c0_i32_0 : i32, i32, i32
  }
  func.func @transform_1(%arg0: i32) -> (i32, i32) {
    %c0_i32 = arith.constant 0 : i32
    %c0_i32_0 = arith.constant 0 : i32
    %c0_i32_1 = arith.constant 0 : i32
    return %c0_i32, %c0_i32_0 : i32, i32
  }
  func.func @transform_2(%arg0: i32) -> (i32, i32, i32) {
    %c0_i32 = arith.constant 0 : i32
    %c0_i32_0 = arith.constant 0 : i32
    %c0_i32_1 = arith.constant 0 : i32
    return %arg0, %c0_i32, %c0_i32_0 : i32, i32, i32
  }
}

</mosaic_0001>

<bundles_post_ra>
// kernel: expansion_contrast_forward.3
= control target key start
LH: loop header
LB: loop body
LE: loop exit
PB: predicated region body
PF: predicated region fallthrough
CT: control target
= control target key end

     0   :  { %v90_v0 = vmov 1   ;;  %v91_v1 = vmov 0   ;;  %s161_s1 = inlined_call_operand.vmem [shape: f32[16,2], index: 1, kind: input, shape index: {}]   ;;  %s162_s0 = inlined_call_operand.vmem [shape: f32[2,16,256], index: 0, kind: input, shape index: {}, may-alias: {0,2}]   ;;  %s163_s2 = inlined_call_operand.vmem [shape: f32[2,16,256], index: 2, kind: output, shape index: {}, may-alias: {0,2}]  }
   0x1   :  { %88 = vset.pattern.permute.xlu1 %v90_v0  ;;  %87 = vset.pattern.permute.xlu0 %v91_v1  ;;  %v11_v2 = vld [vmem:[%s161_s1] sm:$0xff]  ;;  %v12_v3 = vld [vmem:[%s161_s1 + $0x8] sm:$0xff]  ;;  %v15_v14 = vld [vmem:[%s162_s0 + $0x10] sm:$0xff] }
   0x2   :  { %32 = vperm.xlu1 %88, %v11_v2   ;;  %19 = vperm.xlu0 %87, %v11_v2   ;;  %v13_v4 = vld [vmem:[%s162_s0] sm:$0xff]  ;;  %v14_v5 = vld [vmem:[%s162_s0 + $0x8] sm:$0xff]  ;;  %v16_v19 = vld [vmem:[%s162_s0 + $0x18] sm:$0xff] }
   0x3   :  { %v77_v6 = vld [vmem:[%s162_s0 + $0x20] sm:$0xff]  ;;  %v78_v7 = vld [vmem:[%s162_s0 + $0x28] sm:$0xff]  ;;  %v79_v20 = vld [vmem:[%s162_s0 + $0x30] sm:$0xff] }
   0x4   :  { %v80_v21 = vld [vmem:[%s162_s0 + $0x38] sm:$0xff] }
   0x6   :  { %36 = vperm.xlu1 %88, %v12_v3   ;;  %24 = vperm.xlu0 %87, %v12_v3  }
   0xa   :  { %89 = vset.pattern.permute.xlu0 %v90_v0 }
  0x81   :  { %v20_v8 = vpop.permute.xlu0 %19  ;;  %v33_v9 = vpop.permute.xlu1 %32 }
  0x82   :  { %v27_v10 = vmul.f32 %v20_v8, %v13_v4  ;;  %v28_v11 = vmul.f32 %v20_v8, %v14_v5  ;;  %v56_v12 = vmul.f32 %v77_v6, %v20_v8  ;;  %v57_v13 = vmul.f32 %v78_v7, %v20_v8 }
  0x84   :  { %v39_v15 = vadd.f32 %v33_v9, %v27_v10  ;;  %v40_v16 = vadd.f32 %v33_v9, %v28_v11  ;;  %v60_v17 = vadd.f32 %v56_v12, %v33_v9  ;;  %v61_v18 = vadd.f32 %v57_v13, %v33_v9 }
  0x85   :  { %v25_v22 = vpop.permute.xlu0 %24  ;;  %v37_v31 = vpop.permute.xlu1 %36 }
  0x86   :  { %v43_v23 = vmax.f32 %v39_v15, 0.0  ;;  %v44_v24 = vmax.f32 %v40_v16, 0.0  ;;  %v64_v25 = vmax.f32 %v60_v17, 0.0  ;;  %v65_v26 = vmax.f32 %v61_v18, 0.0 }
  0x87   :  { %v29_v27 = vmul.f32 %v25_v22, %v15_v14  ;;  %v30_v28 = vmul.f32 %v25_v22, %v16_v19  ;;  %v58_v29 = vmul.f32 %v79_v20, %v25_v22  ;;  %v59_v30 = vmul.f32 %v80_v21, %v25_v22 }
  0x88   :  { %47 = vst [vmem:[%s163_s2] sm:$0xff] %v43_v23  ;;  %48 = vst [vmem:[%s163_s2 + $0x8] sm:$0xff] %v44_v24 }
  0x89   :  { %81 = vst [vmem:[%s163_s2 + $0x20] sm:$0xff] %v64_v25  ;;  %82 = vst [vmem:[%s163_s2 + $0x28] sm:$0xff] %v65_v26  ;;  %v41_v32 = vadd.f32 %v37_v31, %v29_v27  ;;  %v42_v33 = vadd.f32 %v37_v31, %v30_v28  ;;  %v62_v34 = vadd.f32 %v58_v29, %v37_v31 }
  0x8a   :  { %v63_v35 = vadd.f32 %v59_v30, %v37_v31 }
  0x8b   :  { %v45_v36 = vmax.f32 %v41_v32, 0.0  ;;  %v46_v37 = vmax.f32 %v42_v33, 0.0  ;;  %v66_v38 = vmax.f32 %v62_v34, 0.0 }
  0x8c   :  { %v67_v39 = vmax.f32 %v63_v35, 0.0 }
  0x8d   :  { %49 = vst [vmem:[%s163_s2 + $0x10] sm:$0xff] %v45_v36  ;;  %50 = vst [vmem:[%s163_s2 + $0x18] sm:$0xff] %v46_v37 }
  0x8e   :  { %83 = vst [vmem:[%s163_s2 + $0x30] sm:$0xff] %v66_v38  ;;  %84 = vst [vmem:[%s163_s2 + $0x38] sm:$0xff] %v67_v39 }

// kernel: expansion_contrast_forward.2
= control target key start
LH: loop header
LB: loop body
LE: loop exit
PB: predicated region body
PF: predicated region fallthrough
CT: control target
= control target key end

     0   :  { %s1972_s18 = smov 0   ;;  %s2387_s0 = inlined_call_operand.vmem [shape: f32[2,16,256], index: 0, kind: input, shape index: {}]   ;;  %s2388_s1 = inlined_call_operand.vmem [shape: bf16[16,256], index: 1, kind: input, shape index: {}]   ;;  %s2389_s2 = inlined_call_operand.vmem [shape: bf16[80,272], index: 2, kind: input, shape index: {}]   ;;  %s2390_s3 = inlined_call_operand.vmem [shape: bf16[16,16], index: 3, kind: input, shape index: {}]   ;;  %s2391_s4 = inlined_call_operand.vmem [shape: f32[2,16,256], index: 4, kind: output, shape index: {0}]   ;;  %s2392_s5 = inlined_call_operand.vmem [shape: f32[2,16,2], index: 5, kind: output, shape index: {1}]  }
   0x1 LB: > { %s1756_s19 = sadd.s32 4294967295, %s1922_s18   ;;  %p1760_p0 = scmp.ge.s32.totalorder %s1922_s18, 1  ;;  %s1922_s18 = sphi %s1972_s18, %s16_s18  }
   0x2   : > { %p190_p1 = scmp.lt.s32.totalorder %s1922_s18, 3 }
   0x4   : > { %p191_p2 = pnand %p1760_p0, %p190_p1 }
   0x5   : > { %p223_p3 = scmp.lt.s32.totalorder (!%p191_p2), %s1756_s19, 1  ;;  %s1924_s24 = smov (!%p191_p2), 17   ;;  %v255_v6 = vlaneseq (!%p191_p2)  ;;  %v262_v8 = vld [vmem:[%s2388_s1] sm:$0x11] (!%p191_p2)  ;;  %v1939_v24 = vmov (!%p191_p2), 0  }
   0x6   : > { %194 = sbr.rel (%p191_p2) target bundleno = 3007 (0xbbf), region = 36  ;;  %s1925_s25 = smov (!%p191_p2), 16   ;;  %v263_v10 = vunpack.c.l.bf16 (!%p191_p2), %v262_v8  ;;  %v264_v12 = vunpack.c.h.bf16 (!%p191_p2), %v262_v8  ;;  %v1857_v13 = vld [vmem:[%s2389_s2 + $0x4] ss:$12 sps:$4 sm:$0xff] (!%p191_p2)   ;;  %1021 = vmatprep.mubr.bf16.mxu1 (!%p191_p2), %v1939_v24 }
   0x7   : > { %s1926_s26 = smov (!%p191_p2), 15   ;;  %s1927_s27 = smov (!%p191_p2), 127   ;;  %v2054_v7 = vshrl.u32 (!%p191_p2), %v255_v6, 7  ;;  %v2061_v9 = vand.u32 (!%p191_p2), 127, %v255_v6  ;;  %938 = vmatprep.mubr.bf16.mxu0 (!%p191_p2), %v1857_v13  ;;  %v294_v17 = vld [vmem:[%s2388_s1] sm:$0x11] (!%p191_p2) }
   0x8   : > { %s1928_s28 = smov (!%p191_p2), 111   ;;  %s1929_s29 = smov (!%p191_p2), 112   ;;  %v295_v23 = vunpack.c.l.bf16 (!%p191_p2), %v294_v17  ;;  %v296_v28 = vunpack.c.h.bf16 (!%p191_p2), %v294_v17  ;;  %v326_v37 = vld [vmem:[%s2388_s1] sm:$0x22] (!%p191_p2) }
   0x9   : > { %s1930_s30 = smov (!%p191_p2), 113   ;;  %s1931_s6 = smov (!%p191_p2), 1   ;;  %v2064_v11 = vsub.s32 (!%p191_p2), 0, %v2054_v7  ;;  %vm257_vm0 = vcmp.lt.s32.totalorder (!%p191_p2), %v2061_v9, 17  ;;  %v2091_v32 = vsub.s32 (!%p191_p2), 1, %v2054_v7  ;;  %vm289_vm1 = vcmp.lt.s32.totalorder (!%p191_p2), %v2061_v9, 16 }
   0xa   : > { %s1932_s7 = smov (!%p191_p2), 34   ;;  %s1933_s8 = smov (!%p191_p2), 32   ;;  %v327_v42 = vunpack.c.l.bf16 (!%p191_p2), %v326_v37  ;;  %v328_v43 = vunpack.c.h.bf16 (!%p191_p2), %v326_v37  ;;  %v2102_v44 = vsub.s32 (!%p191_p2), 2, %v2054_v7  ;;  %v358_v57 = vld [vmem:[%s2388_s1] sm:$0x22] (!%p191_p2)  ;;  %vm321_vm2 = vcmp.lt.s32.totalorder (!%p191_p2), %v2061_v9, 15 }
   0xb   : > { %s1934_s9 = smov (!%p191_p2), 30   ;;  %s1935_s10 = smov (!%p191_p2), 126   ;;  %v268_v16 = vrot.slane (!%p191_p2), %v263_v10, %v2064_v11  ;;  %v272_v18 = vrot.slane (!%p191_p2), %v264_v12, %v2064_v11  ;;  %v300_v38 = vrot.slane (!%p191_p2), %v295_v23, %v2091_v32  ;;  %v304_v39 = vrot.slane (!%p191_p2), %v296_v28, %v2091_v32 }
   0xc   : > { %s1936_s11 = smov (!%p191_p2), 94   ;;  %s1937_s12 = smov (!%p191_p2), 96   ;;  %v332_v58 = vrot.slane (!%p191_p2), %v327_v42, %v2102_v44  ;;  %v336_v59 = vrot.slane (!%p191_p2), %v328_v43, %v2102_v44  ;;  %v359_v62 = vunpack.c.l.bf16 (!%p191_p2), %v358_v57  ;;  %v360_v63 = vunpack.c.h.bf16 (!%p191_p2), %v358_v57 }
   0xd   : > { %s2394_s19 = smov (!%p223_p3, %s1756_s19), 1  ;;  %s1938_s15 = smov 98   ;;  %vm353_vm3 = vcmp.lt.s32.totalorder %v2061_v9, 127  ;;  %v2120_v23 = vsub.s32 4, %v2054_v7  ;;  %vm385_vm4 = vcmp.lt.s32.totalorder %v2061_v9, 111  ;;  %vm417_vm5 = vcmp.lt.s32.totalorder %v2061_v9, 112 }
   0xe   : > { %s1794_s20 = sshll.u32 %s2394_s19, 5  ;;  %vm449_vm6 = vcmp.lt.s32.totalorder %v2061_v9, 113  ;;  %vm481_vm7 = vcmp.lt.s32.totalorder %v2061_v9, 1  ;;  %vm513_vm8 = vcmp.lt.s32.totalorder %v2061_v9, 34  ;;  %vm545_vm9 = vcmp.lt.s32.totalorder %v2061_v9, 32 }
   0xf   : > { %s227_s23 = scalar_lea.vmem %s2387_s0, %s1794_s20  ;;  %vm577_vm10 = vcmp.lt.s32.totalorder %v2061_v9, 30  ;;  %vm609_vm11 = vcmp.lt.s32.totalorder %v2061_v9, 126  ;;  %vm641_vm12 = vcmp.lt.s32.totalorder %v2061_v9, 94  ;;  %vm673_vm13 = vcmp.lt.s32.totalorder %v2061_v9, 96 }
  0x10   : > { %v1988_v0 = vld [vmem:[%s227_s23 + $0x8] sm:$0xff]  ;;  %v1990_v1 = vld [vmem:[%s227_s23] sm:$0xff]  ;;  %v1992_v2 = vld [vmem:[%s227_s23 + $0x18] sm:$0xff]  ;;  %vm705_vm14 = vcmp.lt.s32.totalorder %v2061_v9, 98  ;;  %vm737_vm15 = vcmp.lt.s32.totalorder %v2061_v9, 2 }
  0x11   : > { %251 = vrot.lane.b32.xlu1 %v1988_v0, %s1924_s24  ;;  %247 = vrot.lane.b32.xlu0 %v1990_v1, %s1924_s24  ;;  %v1996_v3 = vld [vmem:[%s227_s23 + $0x10] sm:$0xff]  ;;  %v244_v4 = vpack.c.bf16 %v1992_v2, %v1988_v0  ;;  %s1940_s23 = smov 2  }
  0x12   : > { %v243_v5 = vpack.c.bf16 %v1996_v3, %v1990_v1 }
  0x13   : > { %906 = vmatprep.subr.bf16.mxu0 %v244_v4 }
  0x14   : > { %907 = vmatpush1.bf16.msra.mxu0 %v243_v5 }
  0x15   : > { %253 = vrot.lane.b32.xlu1 %v1992_v2, %s1924_s24  ;;  %249 = vrot.lane.b32.xlu0 %v1996_v3, %s1924_s24 }
  0x19   : > { %283 = vrot.lane.b32.xlu1 %v1996_v3, %s1925_s25  ;;  %281 = vrot.lane.b32.xlu0 %v1990_v1, %s1925_s25 }
  0x1d   : > { %287 = vrot.lane.b32.xlu1 %v1992_v2, %s1925_s25  ;;  %285 = vrot.lane.b32.xlu0 %v1988_v0, %s1925_s25 }
  0x21   : > { %315 = vrot.lane.b32.xlu1 %v1996_v3, %s1926_s26  ;;  %313 = vrot.lane.b32.xlu0 %v1990_v1, %s1926_s26 }
  0x25   : > { %319 = vrot.lane.b32.xlu1 %v1992_v2, %s1926_s26  ;;  %317 = vrot.lane.b32.xlu0 %v1988_v0, %s1926_s26 }
  0x29   : > { %347 = vrot.lane.b32.xlu1 %v1996_v3, %s1927_s27  ;;  %345 = vrot.lane.b32.xlu0 %v1990_v1, %s1927_s27 }
  0x2d   : > { %351 = vrot.lane.b32.xlu1 %v1992_v2, %s1927_s27  ;;  %349 = vrot.lane.b32.xlu0 %v1988_v0, %s1927_s27 }
  0x31   : > { %379 = vrot.lane.b32.xlu1 %v1996_v3, %s1928_s28  ;;  %377 = vrot.lane.b32.xlu0 %v1990_v1, %s1928_s28 }
  0x35   : > { %383 = vrot.lane.b32.xlu1 %v1992_v2, %s1928_s28  ;;  %381 = vrot.lane.b32.xlu0 %v1988_v0, %s1928_s28 }
  0x39   : > { %411 = vrot.lane.b32.xlu1 %v1996_v3, %s1929_s29  ;;  %409 = vrot.lane.b32.xlu0 %v1990_v1, %s1929_s29 }
  0x3d   : > { %415 = vrot.lane.b32.xlu1 %v1992_v2, %s1929_s29  ;;  %413 = vrot.lane.b32.xlu0 %v1988_v0, %s1929_s29 }
  0x41   : > { %443 = vrot.lane.b32.xlu1 %v1996_v3, %s1930_s30  ;;  %441 = vrot.lane.b32.xlu0 %v1990_v1, %s1930_s30 }
  0x45   : > { %447 = vrot.lane.b32.xlu1 %v1992_v2, %s1930_s30  ;;  %445 = vrot.lane.b32.xlu0 %v1988_v0, %s1930_s30  ;;  %s232_s30 = scalar_lea.vmem %s2391_s4, %s1794_s20  ;;  %s1796_s20 = sshll.u32 %s2394_s19, 4 }
  0x49   : > { %475 = vrot.lane.b32.xlu1 %v1996_v3, %s1931_s6  ;;  %473 = vrot.lane.b32.xlu0 %v1990_v1, %s1931_s6 }
  0x4d   : > { %479 = vrot.lane.b32.xlu1 %v1992_v2, %s1931_s6  ;;  %477 = vrot.lane.b32.xlu0 %v1988_v0, %s1931_s6 }
  0x51   : > { %507 = vrot.lane.b32.xlu1 %v1996_v3, %s1932_s7  ;;  %505 = vrot.lane.b32.xlu0 %v1990_v1, %s1932_s7 }
  0x55   : > { %511 = vrot.lane.b32.xlu1 %v1992_v2, %s1932_s7  ;;  %509 = vrot.lane.b32.xlu0 %v1988_v0, %s1932_s7 }
  0x59   : > { %539 = vrot.lane.b32.xlu1 %v1996_v3, %s1933_s8  ;;  %537 = vrot.lane.b32.xlu0 %v1990_v1, %s1933_s8 }
  0x5d   : > { %543 = vrot.lane.b32.xlu1 %v1992_v2, %s1933_s8  ;;  %541 = vrot.lane.b32.xlu0 %v1988_v0, %s1933_s8  ;;  %s237_s8 = scalar_lea.vmem %s2392_s5, %s1796_s20 }
  0x61   : > { %571 = vrot.lane.b32.xlu1 %v1996_v3, %s1934_s9  ;;  %569 = vrot.lane.b32.xlu0 %v1990_v1, %s1934_s9 }
  0x65   : > { %575 = vrot.lane.b32.xlu1 %v1992_v2, %s1934_s9  ;;  %573 = vrot.lane.b32.xlu0 %v1988_v0, %s1934_s9 }
  0x69   : > { %603 = vrot.lane.b32.xlu1 %v1996_v3, %s1935_s10  ;;  %601 = vrot.lane.b32.xlu0 %v1990_v1, %s1935_s10 }
  0x6d   : > { %607 = vrot.lane.b32.xlu1 %v1992_v2, %s1935_s10  ;;  %605 = vrot.lane.b32.xlu0 %v1988_v0, %s1935_s10 }
  0x71   : > { %635 = vrot.lane.b32.xlu1 %v1996_v3, %s1936_s11  ;;  %633 = vrot.lane.b32.xlu0 %v1990_v1, %s1936_s11 }
  0x75   : > { %639 = vrot.lane.b32.xlu1 %v1992_v2, %s1936_s11  ;;  %637 = vrot.lane.b32.xlu0 %v1988_v0, %s1936_s11 }
  0x79   : > { %667 = vrot.lane.b32.xlu1 %v1996_v3, %s1937_s12  ;;  %665 = vrot.lane.b32.xlu0 %v1990_v1, %s1937_s12 }
  0x7d   : > { %671 = vrot.lane.b32.xlu1 %v1992_v2, %s1937_s12  ;;  %669 = vrot.lane.b32.xlu0 %v1988_v0, %s1937_s12 }
  0x81   : > { %699 = vrot.lane.b32.xlu1 %v1996_v3, %s1938_s15  ;;  %697 = vrot.lane.b32.xlu0 %v1990_v1, %s1938_s15 }
  0x83   : > { %v252_v14 = vpop.permute.xlu1 %251  ;;  %v248_v15 = vpop.permute.xlu0 %247 }
  0x84   : > { %v260_v19 = vsel %vm257_vm0, %v252_v14, %v248_v15  ;;  %v258_v20 = vsel %vm257_vm0, %v248_v15, %v252_v14 }
  0x85   : > { %703 = vrot.lane.b32.xlu1 %v1992_v2, %s1938_s15  ;;  %701 = vrot.lane.b32.xlu0 %v1988_v0, %s1938_s15  ;;  %v273_v25 = vmul.f32 %v268_v16, %v260_v19  ;;  %v274_v29 = vmul.f32 %v272_v18, %v258_v20 }
  0x87   : > { %v254_v21 = vpop.permute.xlu1 %253  ;;  %v250_v22 = vpop.permute.xlu0 %249 }
  0x88   : > { %v259_v26 = vsel %vm257_vm0, %v250_v22, %v254_v21  ;;  %v261_v27 = vsel %vm257_vm0, %v254_v21, %v250_v22  ;;  %vm890_vm0 = vcmask 130048  }
  0x89   : > { %v275_v30 = vmul.f32 %v268_v16, %v261_v27  ;;  %v276_v31 = vmul.f32 %v272_v18, %v259_v26  ;;  %731 = vrot.lane.b32.xlu1 %v1996_v3, %s1940_s23  ;;  %729 = vrot.lane.b32.xlu0 %v1990_v1, %s1940_s23  ;;  %v390_v16 = vld [vmem:[%s2388_s1] sm:$0x44] }
  0x8a   : > { %v391_v21 = vunpack.c.l.bf16 %v390_v16  ;;  %v392_v22 = vunpack.c.h.bf16 %v390_v16 }
  0x8b   : > { %v284_v33 = vpop.permute.xlu1 %283  ;;  %v282_v34 = vpop.permute.xlu0 %281  ;;  %v278_v35 = vpack.c.bf16 %v276_v31, %v274_v29  ;;  %v277_v36 = vpack.c.bf16 %v275_v30, %v273_v25 }
  0x8d   : > { %735 = vrot.lane.b32.xlu1 %v1992_v2, %s1940_s23  ;;  %733 = vrot.lane.b32.xlu0 %v1988_v0, %s1940_s23  ;;  %v2111_v0 = vsub.s32 3, %v2054_v7 }
  0x8e   : > { %908 = vmatprep.subr.bf16.mxu0 %v278_v35 }
  0x8f   : > { %909 = vmatpush1.bf16.msra.mxu0 %v277_v36  ;;  %v288_v40 = vpop.permute.xlu1 %287  ;;  %v286_v41 = vpop.permute.xlu0 %285  ;;  %v364_v17 = vrot.slane %v359_v62, %v2111_v0  ;;  %v368_v18 = vrot.slane %v360_v63, %v2111_v0 }
  0x90   : > { %v291_v45 = vsel %vm289_vm1, %v284_v33, %v288_v40  ;;  %v293_v46 = vsel %vm289_vm1, %v288_v40, %v284_v33  ;;  %v290_v47 = vsel %vm289_vm1, %v282_v34, %v286_v41  ;;  %v292_v48 = vsel %vm289_vm1, %v286_v41, %v282_v34 }
  0x91   : > { %v307_v49 = vmul.f32 %v300_v38, %v293_v46  ;;  %v308_v50 = vmul.f32 %v304_v39, %v291_v45  ;;  %v305_v51 = vmul.f32 %v300_v38, %v292_v48  ;;  %v306_v52 = vmul.f32 %v304_v39, %v290_v47  ;;  %v422_v38 = vld [vmem:[%s2388_s1] sm:$0x44] }
  0x92   : > { %v396_v39 = vrot.slane %v391_v21, %v2120_v23  ;;  %v400_v40 = vrot.slane %v392_v22, %v2120_v23  ;;  %v423_v43 = vunpack.c.l.bf16 %v422_v38  ;;  %v424_v45 = vunpack.c.h.bf16 %v422_v38 }
  0x93   : > { %v316_v53 = vpop.permute.xlu1 %315  ;;  %v314_v54 = vpop.permute.xlu0 %313  ;;  %v310_v55 = vpack.c.bf16 %v308_v50, %v306_v52  ;;  %v309_v56 = vpack.c.bf16 %v307_v49, %v305_v51  ;;  %v2129_v46 = vsub.s32 5, %v2054_v7 }
  0x95   : > { %910 = vmatprep.subr.bf16.mxu0 %v310_v55 }
  0x96   : > { %911 = vmatpush1.bf16.msra.mxu0 %v309_v56 }
  0x97   : > { %v320_v60 = vpop.permute.xlu1 %319  ;;  %v318_v61 = vpop.permute.xlu0 %317 }
  0x98   : > { %v323_v1 = vsel %vm321_vm2, %v316_v53, %v320_v60  ;;  %v325_v2 = vsel %vm321_vm2, %v320_v60, %v316_v53  ;;  %v322_v3 = vsel %vm321_vm2, %v314_v54, %v318_v61  ;;  %v324_v4 = vsel %vm321_vm2, %v318_v61, %v314_v54 }
  0x99   : > { %v339_v5 = vmul.f32 %v332_v58, %v325_v2  ;;  %v340_v6 = vmul.f32 %v336_v59, %v323_v1  ;;  %v337_v8 = vmul.f32 %v332_v58, %v324_v4  ;;  %v338_v10 = vmul.f32 %v336_v59, %v322_v3  ;;  %v454_v59 = vld [vmem:[%s2388_s1] sm:$0x88] }
  0x9a   : > { %v428_v60 = vrot.slane %v423_v43, %v2129_v46  ;;  %v432_v61 = vrot.slane %v424_v45, %v2129_v46  ;;  %v455_v1 = vunpack.c.l.bf16 %v454_v59  ;;  %v456_v2 = vunpack.c.h.bf16 %v454_v59 }
  0x9b   : > { %v348_v12 = vpop.permute.xlu1 %347  ;;  %v346_v13 = vpop.permute.xlu0 %345  ;;  %v342_v14 = vpack.c.bf16 %v340_v6, %v338_v10  ;;  %v341_v15 = vpack.c.bf16 %v339_v5, %v337_v8  ;;  %v2138_v3 = vsub.s32 6, %v2054_v7 }
  0x9d   : > { %912 = vmatprep.subr.bf16.mxu0 %v342_v14  ;;  %v464_v21 = vrot.slane %v456_v2, %v2138_v3 }
  0x9e   : > { %913 = vmatpush1.bf16.msra.mxu0 %v341_v15 }
  0x9f   : > { %v352_v19 = vpop.permute.xlu1 %351  ;;  %v350_v20 = vpop.permute.xlu0 %349 }
  0xa0   : > { %v355_v25 = vsel %vm353_vm3, %v348_v12, %v352_v19  ;;  %v357_v26 = vsel %vm353_vm3, %v352_v19, %v348_v12  ;;  %v354_v27 = vsel %vm353_vm3, %v346_v13, %v350_v20  ;;  %v356_v28 = vsel %vm353_vm3, %v350_v20, %v346_v13  ;;  %v486_v19 = vld [vmem:[%s2388_s1] sm:$0x88] }
  0xa1   : > { %v371_v29 = vmul.f32 %v364_v17, %v355_v25  ;;  %v372_v30 = vmul.f32 %v368_v18, %v357_v26  ;;  %v369_v31 = vmul.f32 %v364_v17, %v354_v27  ;;  %v370_v33 = vmul.f32 %v368_v18, %v356_v28 }
  0xa2   : > { %v460_v20 = vrot.slane %v455_v1, %v2138_v3  ;;  %v487_v26 = vunpack.c.l.bf16 %v486_v19  ;;  %v488_v27 = vunpack.c.h.bf16 %v486_v19  ;;  %v2147_v28 = vsub.s32 7, %v2054_v7 }
  0xa3   : > { %v380_v34 = vpop.permute.xlu1 %379  ;;  %v378_v35 = vpop.permute.xlu0 %377  ;;  %v374_v36 = vpack.c.bf16 %v372_v30, %v370_v33  ;;  %v373_v37 = vpack.c.bf16 %v371_v29, %v369_v31 }
  0xa4   : > { %v492_v7 = vrot.slane %v487_v26, %v2147_v28  ;;  %v496_v43 = vrot.slane %v488_v27, %v2147_v28 }
  0xa5   : > { %914 = vmatprep.subr.bf16.mxu0 %v374_v36 }
  0xa6   : > { %915 = vmatpush1.bf16.msra.mxu0 %v373_v37 }
  0xa7   : > { %v384_v41 = vpop.permute.xlu1 %383  ;;  %v382_v42 = vpop.permute.xlu0 %381 }
  0xa8   : > { %v387_v47 = vsel %vm385_vm4, %v380_v34, %v384_v41  ;;  %v389_v48 = vsel %vm385_vm4, %v384_v41, %v380_v34  ;;  %v386_v49 = vsel %vm385_vm4, %v378_v35, %v382_v42  ;;  %v388_v50 = vsel %vm385_vm4, %v382_v42, %v378_v35  ;;  %v518_v42 = vld [vmem:[%s2388_s1 + $0x8] sm:$0x11] }
  0xa9   : > { %v403_v51 = vmul.f32 %v396_v39, %v387_v47  ;;  %v404_v52 = vmul.f32 %v400_v40, %v389_v48  ;;  %v401_v53 = vmul.f32 %v396_v39, %v386_v49  ;;  %v402_v54 = vmul.f32 %v400_v40, %v388_v50 }
  0xaa   : > { %v519_v48 = vunpack.c.l.bf16 %v518_v42  ;;  %v520_v49 = vunpack.c.h.bf16 %v518_v42 }
  0xab   : > { %v412_v55 = vpop.permute.xlu1 %411  ;;  %v410_v56 = vpop.permute.xlu0 %409  ;;  %v406_v57 = vpack.c.bf16 %v404_v52, %v402_v54  ;;  %v405_v58 = vpack.c.bf16 %v403_v51, %v401_v53 }
  0xac   : > { %v528_v1 = vrot.slane %v520_v49, %v2064_v11 }
  0xad   : > { %916 = vmatprep.subr.bf16.mxu0 %v406_v57 }
  0xae   : > { %917 = vmatpush1.bf16.msra.mxu0 %v405_v58 }
  0xaf   : > { %v416_v62 = vpop.permute.xlu1 %415  ;;  %v414_v63 = vpop.permute.xlu0 %413 }
  0xb0   : > { %v419_v4 = vsel %vm417_vm5, %v412_v55, %v416_v62  ;;  %v421_v5 = vsel %vm417_vm5, %v416_v62, %v412_v55  ;;  %v418_v6 = vsel %vm417_vm5, %v410_v56, %v414_v63  ;;  %v420_v8 = vsel %vm417_vm5, %v414_v63, %v410_v56  ;;  %v550_v62 = vld [vmem:[%s2388_s1 + $0x8] sm:$0x11] }
  0xb1   : > { %v435_v10 = vmul.f32 %v428_v60, %v419_v4  ;;  %v436_v12 = vmul.f32 %v432_v61, %v421_v5  ;;  %v433_v13 = vmul.f32 %v428_v60, %v418_v6  ;;  %v434_v14 = vmul.f32 %v432_v61, %v420_v8 }
  0xb2   : > { %v524_v63 = vrot.slane %v519_v48, %v2064_v11  ;;  %v551_v5 = vunpack.c.l.bf16 %v550_v62  ;;  %v552_v6 = vunpack.c.h.bf16 %v550_v62  ;;  %v582_v11 = vld [vmem:[%s2388_s1 + $0x8] sm:$0x22] }
  0xb3   : > { %v444_v15 = vpop.permute.xlu1 %443  ;;  %v442_v16 = vpop.permute.xlu0 %441  ;;  %v438_v17 = vpack.c.bf16 %v436_v12, %v434_v14  ;;  %v437_v18 = vpack.c.bf16 %v435_v10, %v433_v13 }
  0xb5   : > { %918 = vmatprep.subr.bf16.mxu0 %v438_v17 }
  0xb6   : > { %919 = vmatpush1.bf16.msra.mxu0 %v437_v18 }
  0xb7   : > { %v448_v22 = vpop.permute.xlu1 %447  ;;  %v446_v25 = vpop.permute.xlu0 %445 }
  0xb8   : > { %v451_v29 = vsel %vm449_vm6, %v444_v15, %v448_v22  ;;  %v453_v30 = vsel %vm449_vm6, %v448_v22, %v444_v15  ;;  %v450_v31 = vsel %vm449_vm6, %v442_v16, %v446_v25  ;;  %v452_v33 = vsel %vm449_vm6, %v446_v25, %v442_v16 }
  0xb9   : > { %v467_v34 = vmul.f32 %v460_v20, %v451_v29  ;;  %v468_v35 = vmul.f32 %v464_v21, %v453_v30  ;;  %v465_v36 = vmul.f32 %v460_v20, %v450_v31  ;;  %v466_v37 = vmul.f32 %v464_v21, %v452_v33 }
  0xba   : > { %v556_v22 = vrot.slane %v551_v5, %v2091_v32  ;;  %v560_v25 = vrot.slane %v552_v6, %v2091_v32  ;;  %v583_v29 = vunpack.c.l.bf16 %v582_v11  ;;  %v584_v30 = vunpack.c.h.bf16 %v582_v11  ;;  %v614_v32 = vld [vmem:[%s2388_s1 + $0x8] sm:$0x22] }
  0xbb   : > { %v476_v38 = vpop.permute.xlu1 %475  ;;  %v474_v39 = vpop.permute.xlu0 %473  ;;  %v470_v40 = vpack.c.bf16 %v468_v35, %v466_v37  ;;  %v469_v41 = vpack.c.bf16 %v467_v34, %v465_v36  ;;  %v615_v49 = vunpack.c.l.bf16 %v614_v32 }
  0xbd   : > { %920 = vmatprep.subr.bf16.mxu0 %v470_v40 }
  0xbe   : > { %921 = vmatpush1.bf16.msra.mxu0 %v469_v41 }
  0xbf   : > { %v480_v45 = vpop.permute.xlu1 %479  ;;  %v478_v47 = vpop.permute.xlu0 %477 }
  0xc0   : > { %v483_v50 = vsel %vm481_vm7, %v476_v38, %v480_v45  ;;  %v485_v51 = vsel %vm481_vm7, %v480_v45, %v476_v38  ;;  %v482_v52 = vsel %vm481_vm7, %v474_v39, %v478_v47  ;;  %v484_v53 = vsel %vm481_vm7, %v478_v47, %v474_v39 }
  0xc1   : > { %v499_v54 = vmul.f32 %v492_v7, %v485_v51  ;;  %v500_v55 = vmul.f32 %v496_v43, %v483_v50  ;;  %v497_v56 = vmul.f32 %v492_v7, %v484_v53  ;;  %v498_v57 = vmul.f32 %v496_v43, %v482_v52 }
  0xc2   : > { %v588_v43 = vrot.slane %v583_v29, %v2102_v44  ;;  %v592_v45 = vrot.slane %v584_v30, %v2102_v44  ;;  %v616_v50 = vunpack.c.h.bf16 %v614_v32  ;;  %v646_v44 = vld [vmem:[%s2388_s1 + $0x8] sm:$0x44]  ;;  %vm1202_vm7 = vcmask 64512  }
  0xc3   : > { %v508_v58 = vpop.permute.xlu1 %507  ;;  %v506_v59 = vpop.permute.xlu0 %505  ;;  %v502_v60 = vpack.c.bf16 %v500_v55, %v498_v57  ;;  %v501_v61 = vpack.c.bf16 %v499_v54, %v497_v56  ;;  %v647_v5 = vunpack.c.l.bf16 %v646_v44  ;;  %v648_v6 = vunpack.c.h.bf16 %v646_v44 }
  0xc5   : > { %922 = vmatprep.subr.bf16.mxu0 %v502_v60  ;;  %v652_v11 = vrot.slane %v647_v5, %v2120_v23 }
  0xc6   : > { %923 = vmatpush1.bf16.msra.mxu0 %v501_v61 }
  0xc7   : > { %v512_v2 = vpop.permute.xlu1 %511  ;;  %v510_v4 = vpop.permute.xlu0 %509 }
  0xc8   : > { %v515_v8 = vsel %vm513_vm8, %v508_v58, %v512_v2  ;;  %v517_v10 = vsel %vm513_vm8, %v512_v2, %v508_v58  ;;  %v514_v12 = vsel %vm513_vm8, %v506_v59, %v510_v4  ;;  %v516_v13 = vsel %vm513_vm8, %v510_v4, %v506_v59 }
  0xc9   : > { %v531_v14 = vmul.f32 %v524_v63, %v517_v10  ;;  %v532_v15 = vmul.f32 %v528_v1, %v515_v8  ;;  %v529_v16 = vmul.f32 %v524_v63, %v516_v13  ;;  %v530_v17 = vmul.f32 %v528_v1, %v514_v12 }
  0xca   : > { %v620_v63 = vrot.slane %v615_v49, %v2111_v0  ;;  %v624_v1 = vrot.slane %v616_v50, %v2111_v0  ;;  %v678_v0 = vld [vmem:[%s2388_s1 + $0x8] sm:$0x44] }
  0xcb   : > { %v540_v18 = vpop.permute.xlu1 %539  ;;  %v538_v19 = vpop.permute.xlu0 %537  ;;  %v534_v20 = vpack.c.bf16 %v532_v15, %v530_v17  ;;  %v533_v21 = vpack.c.bf16 %v531_v14, %v529_v16  ;;  %v680_v29 = vunpack.c.h.bf16 %v678_v0 }
  0xcd   : > { %924 = vmatprep.subr.bf16.mxu0 %v534_v20  ;;  %v688_v32 = vrot.slane %v680_v29, %v2129_v46 }
  0xce   : > { %925 = vmatpush1.bf16.msra.mxu0 %v533_v21 }
  0xcf   : > { %v544_v26 = vpop.permute.xlu1 %543  ;;  %v542_v27 = vpop.permute.xlu0 %541 }
  0xd0   : > { %v547_v31 = vsel %vm545_vm9, %v540_v18, %v544_v26  ;;  %v549_v33 = vsel %vm545_vm9, %v544_v26, %v540_v18  ;;  %v546_v34 = vsel %vm545_vm9, %v538_v19, %v542_v27  ;;  %v548_v35 = vsel %vm545_vm9, %v542_v27, %v538_v19 }
  0xd1   : > { %v563_v36 = vmul.f32 %v556_v22, %v549_v33  ;;  %v564_v37 = vmul.f32 %v560_v25, %v547_v31  ;;  %v561_v38 = vmul.f32 %v556_v22, %v548_v35  ;;  %v562_v39 = vmul.f32 %v560_v25, %v546_v34 }
  0xd2   : > { %v656_v22 = vrot.slane %v648_v6, %v2120_v23  ;;  %v679_v27 = vunpack.c.l.bf16 %v678_v0  ;;  %v710_v23 = vld [vmem:[%s2388_s1 + $0x8] sm:$0x88] }
  0xd3   : > { %v572_v40 = vpop.permute.xlu1 %571  ;;  %v570_v41 = vpop.permute.xlu0 %569  ;;  %v566_v42 = vpack.c.bf16 %v564_v37, %v562_v39  ;;  %v565_v7 = vpack.c.bf16 %v563_v36, %v561_v38 }
  0xd5   : > { %926 = vmatprep.subr.bf16.mxu0 %v566_v42 }
  0xd6   : > { %927 = vmatpush1.bf16.msra.mxu0 %v565_v7  ;;  %v684_v7 = vrot.slane %v679_v27, %v2129_v46  ;;  %v742_v46 = vld [vmem:[%s2388_s1 + $0x8] sm:$0x88] }
  0xd7   : > { %v576_v47 = vpop.permute.xlu1 %575  ;;  %v574_v48 = vpop.permute.xlu0 %573 }
  0xd8   : > { %v579_v51 = vsel %vm577_vm10, %v572_v40, %v576_v47  ;;  %v581_v52 = vsel %vm577_vm10, %v576_v47, %v572_v40  ;;  %v578_v53 = vsel %vm577_vm10, %v570_v41, %v574_v48  ;;  %v580_v54 = vsel %vm577_vm10, %v574_v48, %v570_v41 }
  0xd9   : > { %v595_v55 = vmul.f32 %v588_v43, %v581_v52  ;;  %v596_v56 = vmul.f32 %v592_v45, %v579_v51  ;;  %v593_v57 = vmul.f32 %v588_v43, %v580_v54  ;;  %v594_v58 = vmul.f32 %v592_v45, %v578_v53 }
  0xda   : > { %v711_v47 = vunpack.c.l.bf16 %v710_v23  ;;  %v712_v48 = vunpack.c.h.bf16 %v710_v23 }
  0xdb   : > { %v604_v59 = vpop.permute.xlu1 %603  ;;  %v602_v60 = vpop.permute.xlu0 %601  ;;  %v598_v61 = vpack.c.bf16 %v596_v56, %v594_v58  ;;  %v597_v62 = vpack.c.bf16 %v595_v55, %v593_v57 }
  0xdd   : > { %928 = vmatprep.subr.bf16.mxu0 %v598_v61  ;;  %v716_v61 = vrot.slane %v711_v47, %v2138_v3 }
  0xde   : > { %929 = vmatpush1.bf16.msra.mxu0 %v597_v62  ;;  %v720_v62 = vrot.slane %v712_v48, %v2138_v3 }
  0xdf   : > { %v608_v2 = vpop.permute.xlu1 %607  ;;  %v606_v4 = vpop.permute.xlu0 %605 }
  0xe0   : > { %v611_v8 = vsel %vm609_vm11, %v604_v59, %v608_v2  ;;  %v613_v10 = vsel %vm609_vm11, %v608_v2, %v604_v59  ;;  %v610_v12 = vsel %vm609_vm11, %v602_v60, %v606_v4  ;;  %v612_v13 = vsel %vm609_vm11, %v606_v4, %v602_v60 }
  0xe1   : > { %v627_v14 = vmul.f32 %v620_v63, %v611_v8  ;;  %v628_v15 = vmul.f32 %v624_v1, %v613_v10  ;;  %v625_v16 = vmul.f32 %v620_v63, %v610_v12  ;;  %v626_v17 = vmul.f32 %v624_v1, %v612_v13 }
  0xe2   : > { %v743_v1 = vunpack.c.l.bf16 %v742_v46  ;;  %v744_v2 = vunpack.c.h.bf16 %v742_v46 }
  0xe3   : > { %v636_v18 = vpop.permute.xlu1 %635  ;;  %v634_v19 = vpop.permute.xlu0 %633  ;;  %v630_v20 = vpack.c.bf16 %v628_v15, %v626_v17  ;;  %v629_v21 = vpack.c.bf16 %v627_v14, %v625_v16 }
  0xe4   : > { %v748_v3 = vrot.slane %v743_v1, %v2147_v28 }
  0xe5   : > { %930 = vmatprep.subr.bf16.mxu0 %v630_v20  ;;  %v752_v20 = vrot.slane %v744_v2, %v2147_v28 }
  0xe6   : > { %931 = vmatpush1.bf16.msra.mxu0 %v629_v21  ;;  %v1859_v21 = vld [vmem:[%s2389_s2 + $0x1c] ss:$12 sps:$4 sm:$0xff]  }
  0xe7   : > { %v640_v25 = vpop.permute.xlu1 %639  ;;  %v638_v26 = vpop.permute.xlu0 %637 }
  0xe8   : > { %v643_v30 = vsel %vm641_vm12, %v636_v18, %v640_v25  ;;  %v645_v31 = vsel %vm641_vm12, %v640_v25, %v636_v18  ;;  %v642_v33 = vsel %vm641_vm12, %v634_v19, %v638_v26  ;;  %v644_v34 = vsel %vm641_vm12, %v638_v26, %v634_v19  ;;  %v1855_v19 = vld [vmem:[%s2389_s2] ss:$12 sps:$4 sm:$0xff]  }
  0xe9   : > { %v659_v35 = vmul.f32 %v652_v11, %v643_v30  ;;  %v660_v36 = vmul.f32 %v656_v22, %v645_v31  ;;  %v657_v37 = vmul.f32 %v652_v11, %v642_v33  ;;  %v658_v38 = vmul.f32 %v656_v22, %v644_v34 }
  0xeb   : > { %v668_v39 = vpop.permute.xlu1 %667  ;;  %v666_v40 = vpop.permute.xlu0 %665  ;;  %v662_v41 = vpack.c.bf16 %v660_v36, %v658_v38  ;;  %v661_v42 = vpack.c.bf16 %v659_v35, %v657_v37  ;;  %v1858_v35 = vld [vmem:[%s2389_s2 + $0x8] ss:$12 sps:$4 sm:$0xff]   ;;  %v1861_v36 = vld [vmem:[%s2389_s2 + $0x18] ss:$12 sps:$4 sm:$0xff]   ;;  %v1862_v37 = vld [vmem:[%s2389_s2 + $0x20] ss:$12 sps:$4 sm:$0xff]  }
  0xec   : > { %v1863_v38 = vld [vmem:[%s2389_s2 + $0x34] ss:$12 sps:$4 sm:$0xff]  }
  0xed   : > { %932 = vmatprep.subr.bf16.mxu0 %v662_v41  ;;  %v1867_v41 = vld [vmem:[%s2389_s2 + $0x50] ss:$12 sps:$4 sm:$0xff]  }
  0xee   : > { %933 = vmatpush1.bf16.msra.mxu0 %v661_v42  ;;  %v1868_v42 = vld [vmem:[%s2389_s2 + $0x68] ss:$12 sps:$4 sm:$0xff]  }
  0xef   : > { %v672_v43 = vpop.permute.xlu1 %671  ;;  %v670_v45 = vpop.permute.xlu0 %669 }
  0xf0   : > { %v675_v49 = vsel %vm673_vm13, %v668_v39, %v672_v43  ;;  %v677_v50 = vsel %vm673_vm13, %v672_v43, %v668_v39  ;;  %v674_v51 = vsel %vm673_vm13, %v666_v40, %v670_v45  ;;  %v676_v52 = vsel %vm673_vm13, %v670_v45, %v666_v40  ;;  %v1865_v39 = vld [vmem:[%s2389_s2 + $0x38] ss:$12 sps:$4 sm:$0xff]   ;;  %v1866_v40 = vld [vmem:[%s2389_s2 + $0x30] ss:$12 sps:$4 sm:$0xff]  }
  0xf1   : > { %v691_v53 = vmul.f32 %v684_v7, %v675_v49  ;;  %v692_v54 = vmul.f32 %v688_v32, %v677_v50  ;;  %v689_v55 = vmul.f32 %v684_v7, %v674_v51  ;;  %v690_v56 = vmul.f32 %v688_v32, %v676_v52 }
  0xf3   : > { %v700_v57 = vpop.permute.xlu1 %699  ;;  %v698_v58 = vpop.permute.xlu0 %697  ;;  %v694_v59 = vpack.c.bf16 %v692_v54, %v690_v56  ;;  %v693_v60 = vpack.c.bf16 %v691_v53, %v689_v55 }
  0xf5   : > { %934 = vmatprep.subr.bf16.mxu0 %v694_v59 }
  0xf6   : > { %935 = vmatpush1.bf16.msra.mxu0 %v693_v60 }
  0xf7   : > { %v704_v44 = vpop.permute.xlu1 %703  ;;  %v702_v63 = vpop.permute.xlu0 %701 }
  0xf8   : > { %v707_v4 = vsel %vm705_vm14, %v700_v57, %v704_v44  ;;  %v709_v5 = vsel %vm705_vm14, %v704_v44, %v700_v57  ;;  %v706_v6 = vsel %vm705_vm14, %v698_v58, %v702_v63  ;;  %v708_v8 = vsel %vm705_vm14, %v702_v63, %v698_v58 }
  0xf9   : > { %v723_v10 = vmul.f32 %v716_v61, %v707_v4  ;;  %v724_v12 = vmul.f32 %v720_v62, %v709_v5  ;;  %v721_v13 = vmul.f32 %v716_v61, %v706_v6  ;;  %v722_v14 = vmul.f32 %v720_v62, %v708_v8  ;;  %v1869_v4 = vld [vmem:[%s2389_s2 + $0x4c] ss:$12 sps:$4 sm:$0xff]   ;;  %v1871_v5 = vld [vmem:[%s2389_s2 + $0x48] ss:$12 sps:$4 sm:$0xff]  }
  0xfa   : > { %vm1652_vm14 = vcmask 7168  }
  0xfb   : > { %v732_v15 = vpop.permute.xlu1 %731  ;;  %v730_v16 = vpop.permute.xlu0 %729  ;;  %v726_v17 = vpack.c.bf16 %v724_v12, %v722_v14  ;;  %v725_v18 = vpack.c.bf16 %v723_v10, %v721_v13  ;;  %v1872_v12 = vld [vmem:[%s2389_s2 + $0x64] ss:$12 sps:$4 sm:$0xff]   ;;  %v1874_v13 = vld [vmem:[%s2389_s2 + $0x60] ss:$12 sps:$4 sm:$0xff]  }
  0xfd   : > { %936 = vmatprep.subr.bf16.mxu0 %v726_v17 }
  0xfe   : > { %937 = vmatpush1.bf16.msra.mxu0 %v725_v18 }
  0xff   : > { %v736_v0 = vpop.permute.xlu1 %735  ;;  %v734_v11 = vpop.permute.xlu0 %733 }
 0x100   : > { %v739_v22 = vsel %vm737_vm15, %v732_v15, %v736_v0  ;;  %v741_v25 = vsel %vm737_vm15, %v736_v0, %v732_v15  ;;  %v738_v26 = vsel %vm737_vm15, %v730_v16, %v734_v11  ;;  %v740_v27 = vsel %vm737_vm15, %v734_v11, %v730_v16 }
 0x101   : > { %v755_v28 = vmul.f32 %v748_v3, %v741_v25  ;;  %v753_v29 = vmul.f32 %v748_v3, %v740_v27  ;;  %v754_v30 = vmul.f32 %v752_v20, %v738_v26  ;;  %v756_v31 = vmul.f32 %v752_v20, %v739_v22  ;;  %939 = vmatmul.mubr.bf16.vlgmr.msra.gmra.mrb[0].mxu0 %v1855_v19 }
 0x102   : > { %948 = vmatprep.mubr.bf16.mxu0 %v1859_v21 }
 0x103   : > { %v758_v33 = vpack.c.bf16 %v756_v31, %v754_v30  ;;  %v757_v34 = vpack.c.bf16 %v755_v28, %v753_v29 }
 0x105   : > { %989 = vmatprep.subr.bf16.mxu1 %v758_v33 }
 0x106   : > { %990 = vmatpush1.bf16.msra.mxu1 %v757_v34 }
 0x109   : > { %1782 = vmatmul.mubr.msk.bf16.vlgmr.msra.gmra.mrb[0].mxu1 %vm890_vm0, %v1858_v35  ;;  %949 = vmatmul.mubr.bf16.gmra.mrb[4].mxu0 %v1861_v36 }
 0x10a   : > { %1031 = vmatprep.mubr.bf16.mxu1 %v1939_v24  ;;  %958 = vmatprep.mubr.bf16.mxu0 %v1863_v38 }
 0x111   : > { %1783 = vmatmul.mubr.msk.bf16.gmra.mrb[4].mxu1 %vm890_vm0, %v1862_v37  ;;  %959 = vmatmul.mubr.bf16.gmra.mrb[8].mxu0 %v1866_v40 }
 0x112   : > { %1041 = vmatprep.mubr.bf16.mxu1 %v1939_v24  ;;  %968 = vmatprep.mubr.bf16.mxu0 %v1869_v4 }
 0x119   : > { %1784 = vmatmul.mubr.msk.bf16.gmra.mrb[8].mxu1 %vm890_vm0, %v1865_v39  ;;  %969 = vmatmul.mubr.bf16.gmra.mrb[12].mxu0 %v1871_v5 }
 0x11a   : > { %1051 = vmatprep.mubr.bf16.mxu1 %v1939_v24  ;;  %978 = vmatprep.mubr.bf16.mxu0 %v1872_v12 }
 0x121   : > { %1785 = vmatmul.mubr.msk.bf16.gmra.mrb[12].mxu1 %vm890_vm0, %v1867_v41  ;;  %979 = vmatmul.mubr.bf16.gmra.mrb[16].mxu0 %v1874_v13 }
 0x122   : > { %1061 = vmatprep.mubr.bf16.mxu1 %v1939_v24 }
 0x129   : > { %1786 = vmatmul.mubr.msk.bf16.gmra.mrb[16].mxu1 %vm890_vm0, %v1868_v42 }
 0x1d4   : > { %v940_v23 = vpop.f32.mrb[0].mxu0 }
 0x1d5   : > { %v942_v7 = vpop.f32.mrb[1].mxu0 }
 0x1d6   : > { %v944_v32 = vpop.f32.mrb[2].mxu0 }
 0x1d7   : > { %v946_v43 = vpop.f32.mrb[3].mxu0 }
 0x1dc   : > { %v1023_v45 = vpop.f32.mrb[0].mxu1  ;;  %v950_v47 = vpop.f32.mrb[4].mxu0 }
 0x1dd   : > { %v2247_v48 = vadd.f32 %v1023_v45, %v940_v23  ;;  %v1025_v49 = vpop.f32.mrb[1].mxu1  ;;  %v952_v50 = vpop.f32.mrb[5].mxu0 }
 0x1de   : > { %v2249_v51 = vadd.f32 %v1025_v49, %v942_v7  ;;  %v1027_v52 = vpop.f32.mrb[2].mxu1  ;;  %v954_v14 = vpop.f32.mrb[6].mxu0 }
 0x1df   : > { %v1102_v53 = vmul.f32 %v2247_v48, %v2247_v48  ;;  %v2253_v54 = vadd.f32 %v1027_v52, %v944_v32  ;;  %v1029_v55 = vpop.f32.mrb[3].mxu1  ;;  %v956_v16 = vpop.f32.mrb[7].mxu0 }
 0x1e0   : > { %v1103_v56 = vmul.f32 %v2249_v51, %v2249_v51  ;;  %v1030_v57 = vadd.f32 %v1029_v55, %v946_v43 }
 0x1e1   : > { %v1117_v58 = vmul.f32 %v2253_v54, %v2253_v54 }
 0x1e2   : > { %v1118_v59 = vmul.f32 %v1030_v57, %v1030_v57  ;;  %v1104_v60 = vadd.f32 %v1103_v56, %v1102_v53 }
 0x1e4   : > { %v1033_v46 = vpop.f32.mrb[4].mxu1  ;;  %1105 = vadd.xlane.f32.xlu0 %v1104_v60  ;;  %v1121_v61 = vadd.f32 %v1118_v59, %v1117_v58  ;;  %v960_v18 = vpop.f32.mrb[8].mxu0 }
 0x1e5   : > { %v1034_v62 = vadd.f32 %v1033_v46, %v950_v47  ;;  %v1035_v44 = vpop.f32.mrb[5].mxu1  ;;  %v962_v19 = vpop.f32.mrb[9].mxu0 }
 0x1e6   : > { %v1036_v63 = vadd.f32 %v1035_v44, %v952_v50  ;;  %1122 = vadd.xlane.f32.xlu1 %v1121_v61  ;;  %v1037_v15 = vpop.f32.mrb[6].mxu1  ;;  %v964_v50 = vpop.f32.mrb[10].mxu0 }
 0x1e7   : > { %v1151_v1 = vpack.c.bf16 %v1034_v62, %v2253_v54  ;;  %v1119_v6 = vmul.f32 %v1034_v62, %v1034_v62  ;;  %v1039_v17 = vpop.f32.mrb[7].mxu1  ;;  %v1038_v21 = vadd.f32 %v1037_v15, %v954_v14  ;;  %v966_v52 = vpop.f32.mrb[11].mxu0 }
 0x1e8   : > { %v1152_v2 = vpack.c.bf16 %v1036_v63, %v1030_v57  ;;  %v1120_v8 = vmul.f32 %v1036_v63, %v1036_v63  ;;  %v1040_v0 = vadd.f32 %v1039_v17, %v956_v16 }
 0x1ea   : > { %1185 = vmatprep.mubr.bf16.mxu1 %v1152_v2  ;;  %v1124_v10 = vadd.f32 %v1120_v8, %v1119_v6 }
 0x1ec   : > { %1125 = vadd.xlane.f32.xlu0 %v1124_v10  ;;  %v1043_v3 = vpop.f32.mrb[8].mxu1  ;;  %v970_v55 = vpop.f32.mrb[12].mxu0 }
 0x1ed   : > { %v1045_v20 = vpop.f32.mrb[9].mxu1  ;;  %v1044_v11 = vadd.f32 %v1043_v3, %v960_v18  ;;  %v972_v56 = vpop.f32.mrb[13].mxu0 }
 0x1ee   : > { %v1046_v22 = vadd.f32 %v1045_v20, %v962_v19  ;;  %v1047_v27 = vpop.f32.mrb[10].mxu1 }
 0x1ef   : > { %v1275_v25 = vpack.c.bf16 %v1044_v11, %v1038_v21  ;;  %v1049_v28 = vpop.f32.mrb[11].mxu1  ;;  %v2275_v53 = vadd.f32 %v1047_v27, %v964_v50 }
 0x1f0   : > { %v1276_v26 = vpack.c.bf16 %v1046_v22, %v1040_v0  ;;  %v2277_v54 = vadd.f32 %v1049_v28, %v966_v52 }
 0x1f1   : > { %v1349_v9 = vmul.f32 %v2275_v53, %v2275_v53 }
 0x1f4   : > { %v1053_v29 = vpop.f32.mrb[12].mxu1 }
 0x1f5   : > { %v1055_v30 = vpop.f32.mrb[13].mxu1 }
 0x1f6   : > { %v1057_v31 = vpop.f32.mrb[14].mxu1  ;;  %v2281_v58 = vadd.f32 %v1055_v30, %v972_v56 }
 0x1f7   : > { %v1059_v33 = vpop.f32.mrb[15].mxu1 }
 0x1f8   : > { %v1365_v61 = vmul.f32 %v2281_v58, %v2281_v58 }
 0x1fc   : > { %v1063_v34 = vpop.f32.mrb[16].mxu1 }
 0x1fd   : > { %v1065_v35 = vpop.f32.mrb[17].mxu1 }
 0x1fe   : > { %v1067_v36 = vpop.f32.mrb[18].mxu1 }
 0x1ff   : > { %v1069_v37 = vpop.f32.mrb[19].mxu1 }
 0x271   : > { %v1106_v38 = vpop.xlane.xlu0 %1105 }
 0x272   : > { %1876 = vrsqrt.f32 %v1106_v38  ;;  %vm1109_vm1 = vcmp.eq.f32.partialorder %v1106_v38, inf  ;;  %v1112_v41 = vand.u32 2147483648, %v1106_v38  ;;  %vm1111_vm2 = vcmp.eq.f32.partialorder %v1106_v38, 0.0 }
 0x273   : > { %v1123_v18 = vpop.xlane.xlu1 %1122 }
 0x274   : > { %vm1129_vm3 = vcmp.eq.f32.partialorder %v1123_v18, inf  ;;  %v1132_v22 = vand.u32 2147483648, %v1123_v18  ;;  %vm1131_vm5 = vcmp.eq.f32.partialorder %v1123_v18, 0.0 }
 0x279   : > { %v1126_v3 = vpop.xlane.xlu0 %1125 }
 0x27a   : > { %vm1136_vm4 = vcmp.eq.f32.partialorder %v1126_v3, inf  ;;  %vm1138_vm6 = vcmp.eq.f32.partialorder %v1126_v3, 0.0 }
 0x27c   : > { %v1877_v39 = vpop.eup %1876 }
 0x27d   : > { %v1108_v40 = vmul.f32 %v1877_v39, %v1106_v38 }
 0x27f   : > { %v1110_v42 = vsel %vm1109_vm1, %v1106_v38, %v1108_v40 }
 0x280   : > { %v1113_v23 = vsel %vm1111_vm2, %v1112_v41, %v1110_v42 }
 0x281   : > { %v1114_v7 = vmax.f32 %v1113_v23, 1e-12 }
 0x283   : > { %1878 = vrcp.f32 %v1114_v7 }
 0x284   : > { %1880 = vrsqrt.f32 %v1123_v18 }
 0x285   : > { %1882 = vrsqrt.f32 %v1126_v3 }
 0x28d   : > { %v1879_v32 = vpop.eup %1878 }
 0x28e   : > { %v1148_v43 = vmul.f32 %v1879_v32, %v2249_v51  ;;  %v1147_v45 = vmul.f32 %v1879_v32, %v2247_v48  ;;  %v974_v51 = vpop.f32.mrb[14].mxu0  ;;  %v2279_v48 = vadd.f32 %v1053_v29, %v970_v55  ;;  %v1881_v19 = vpop.eup %1880 }
 0x28f   : > { %v976_v57 = vpop.f32.mrb[15].mxu0  ;;  %v2283_v59 = vadd.f32 %v1057_v31, %v974_v51  ;;  %v1883_v20 = vpop.eup %1882  ;;  %v1128_v21 = vmul.f32 %v1881_v19, %v1123_v18 }
 0x290   : > { %v1150_v47 = vpack.c.bf16 %v1148_v43, %v1148_v43  ;;  %v1149_v49 = vpack.c.bf16 %v1147_v45, %v1147_v45  ;;  %v2285_v60 = vadd.f32 %v1059_v33, %v976_v57  ;;  %v1364_v46 = vmul.f32 %v2279_v48, %v2279_v48  ;;  %v980_v2 = vpop.f32.mrb[16].mxu0 }
 0x291   : > { %v1366_v62 = vmul.f32 %v2283_v59, %v2283_v59  ;;  %v1398_v44 = vpack.c.bf16 %v2283_v59, %v2279_v48  ;;  %v982_v5 = vpop.f32.mrb[17].mxu0  ;;  %v2299_v12 = vadd.f32 %v1063_v34, %v980_v2  ;;  %v1135_v0 = vmul.f32 %v1883_v20, %v1126_v3 }
 0x292   : > { %1153 = vmatprep.subr.bf16.mxu1 %v1150_v47  ;;  %v1367_v63 = vmul.f32 %v2285_v60, %v2285_v60  ;;  %v1368_v4 = vadd.f32 %v1365_v61, %v1364_v46  ;;  %v984_v8 = vpop.f32.mrb[18].mxu0  ;;  %v2301_v13 = vadd.f32 %v1065_v35, %v982_v5  ;;  %v1130_v11 = vsel %vm1129_vm3, %v1123_v18, %v1128_v21 }
 0x293   : > { %1154 = vmatpush1.bf16.xpose.msra.mxu1 %v1149_v49  ;;  %v986_v10 = vpop.f32.mrb[19].mxu0  ;;  %v2303_v14 = vadd.f32 %v1067_v36, %v984_v8  ;;  %v1133_v27 = vsel %vm1131_vm5, %v1132_v22, %v1130_v11  ;;  %v1941_v35 = vmov 0.0   ;;  %v1350_v47 = vmul.f32 %v2277_v54, %v2277_v54 }
 0x294   : > { %1296 = vmatprep.subr.bf16.mxu1 %v1276_v26  ;;  %v1371_v6 = vadd.f32 %v1367_v63, %v1366_v62  ;;  %v2305_v15 = vadd.f32 %v1069_v37, %v986_v10  ;;  %v1137_v26 = vsel %vm1136_vm4, %v1126_v3, %v1135_v0  ;;  %v1141_v29 = vmax.f32 %v1133_v27, 1e-12 }
 0x295   : > { %v1519_v16 = vpack.c.bf16 %v2303_v14, %v2299_v12  ;;  %v2313_v36 = vsel %vm737_vm15, 1.0, %v1941_v35  ;;  %v1351_v50 = vadd.f32 %v1350_v47, %v1349_v9  ;;  %vm1665_vm15 = vcmask 15368  }
 0x296   : > { %v1520_v17 = vpack.c.bf16 %v2305_v15, %v2301_v13  ;;  %1884 = vrcp.f32 %v1141_v29 }
 0x29a   : > { %1186 = vmatmul.mubr.bf16.vlgmr.msra.gmra.mrb[20].mxu1 %v1151_v1  ;;  %v1399_v1 = vpack.c.bf16 %v2285_v60, %v2281_v58 }
 0x29b   : > { %1297 = vmatpush1.bf16.msra.mxu1 %v1275_v25  ;;  %1328 = vmatprep.mubr.bf16.mxu1 %v1939_v24  ;;  %v1139_v25 = vand.u32 2147483648, %v1126_v3 }
 0x29d   : > { %v1140_v28 = vsel %vm1138_vm6, %v1139_v25, %v1137_v26 }
 0x29e   : > { %v1142_v30 = vmax.f32 %v1140_v28, 1e-12 }
 0x2a0   : > { %1886 = vrcp.f32 %v1142_v30  ;;  %v1885_v31 = vpop.eup %1884 }
 0x2a1   : > { %v1194_v34 = vmul.f32 0.0625, %v1885_v31 }
 0x2aa   : > { %v1887_v33 = vpop.eup %1886 }
 0x2ab   : > { %v1195_v40 = vmul.f32 0.0625, %v1887_v33 }
 0x36d   : > { %v1187_v37 = vpop.f32.mrb[20].mxu1 }
 0x36e   : > { %v1196_v38 = vmul.f32 %v1194_v34, %v1187_v37  ;;  %v1189_v39 = vpop.f32.mrb[21].mxu1 }
 0x36f   : > { %v1190_v41 = vpop.f32.mrb[22].mxu1 }
 0x370   : > { %v1200_v42 = vmul.f32 %v2313_v36, %v1196_v38  ;;  %v1197_v23 = vmul.f32 %v1195_v40, %v1190_v41  ;;  %v1192_v7 = vpop.f32.mrb[23].mxu1 }
 0x372   : > { %v1201_v32 = vmul.f32 %v2313_v36, %v1197_v23  ;;  %v1203_v43 = vsel %vm1202_vm7, %v1200_v42, 0.0 }
 0x374   : > { %v1204_v45 = vsel %vm1202_vm7, %v1201_v32, 0.0 }
 0x375   : > { %v1205_v49 = vadd.f32 %v1204_v45, %v1203_v43 }
 0x377   : > { %1206 = vadd.xlane.f32.xlu0 %v1205_v49 }
 0x37b   : > { %1352 = vadd.xlane.f32.xlu0 %v1351_v50 }
 0x37f   : > { %1369 = vadd.xlane.f32.xlu0 %v1368_v4 }
 0x383   : > { %1372 = vadd.xlane.f32.xlu0 %v1371_v6 }
 0x404   : > { %v1207_v52 = vpop.xlane.xlu0 %1206 }
 0x405   : > { %v1208_v55 = vrot.slane %v1207_v52, 4 }
 0x407   : > { %v1209_v56 = vadd.f32 %v1208_v55, %v1207_v52 }
 0x408   : > { %v1353_v51 = vpop.xlane.xlu0 %1352 }
 0x409   : > { %v1210_v57 = vrot.slane %v1209_v56, 2  ;;  %1888 = vrsqrt.f32 %v1353_v51  ;;  %vm1356_vm8 = vcmp.eq.f32.partialorder %v1353_v51, inf  ;;  %v1359_v5 = vand.u32 2147483648, %v1353_v51 }
 0x40a   : > { %vm1358_vm9 = vcmp.eq.f32.partialorder %v1353_v51, 0.0 }
 0x40b   : > { %v1211_v46 = vadd.f32 %v1210_v57, %v1209_v56 }
 0x40d   : > { %v1212_v61 = vrot.slane %v1211_v46, 1 }
 0x40f   : > { %v1213_v62 = vadd.f32 %v1212_v61, %v1211_v46 }
 0x411   : > { %1817 = vpush %v1213_v62 }
 0x413   : > { %v1889_v63 = vpop.eup %1888 }
 0x414   : > { %v1355_v2 = vmul.f32 %v1889_v63, %v1353_v51 }
 0x416   : > { %v1357_v8 = vsel %vm1356_vm8, %v1353_v51, %v1355_v2 }
 0x417   : > { %v1360_v10 = vsel %vm1358_vm9, %v1359_v5, %v1357_v8 }
 0x418   : > { %v1361_v18 = vmax.f32 %v1360_v10, 1e-12 }
 0x41a   : > { %1890 = vrcp.f32 %v1361_v18 }
 0x424   : > { %v2323_v4 = vpop.eup %1890 }
 0x425   : > { %v1395_v6 = vmul.f32 %v2323_v4, %v2277_v54 }
 0x427   : > { %v1397_v3 = vpack.c.bf16 %v1395_v6, %v1395_v6 }
 0x429   : > { %1400 = vmatprep.subr.bf16.mxu1 %v1397_v3 }
 0x442   : > { %s1818_s11 = spop %1817 }
 0x443   : > { %s1217_s12 = smul.f32 0.03125, %s1818_s11 }
 0x445   : > { %v1218_v19 = vstv %s1217_s12 }
 0x446   : > { %v1219_v20 = vsub.f32 %v1196_v38, %v1218_v19  ;;  %v1220_v21 = vsub.f32 %v1197_v23, %v1218_v19 }
 0x448   : > { %v1221_v0 = vmul.f32 %v2313_v36, %v1219_v20  ;;  %v1222_v11 = vmul.f32 %v2313_v36, %v1220_v21 }
 0x44a   : > { %v1223_v22 = vmul.f32 %v1221_v0, %v1221_v0  ;;  %v1224_v25 = vmul.f32 %v1222_v11, %v1222_v11 }
 0x44c   : > { %v1225_v26 = vsel %vm1202_vm7, %v1223_v22, 0.0  ;;  %v1226_v27 = vsel %vm1202_vm7, %v1224_v25, 0.0 }
 0x44d   : > { %v1227_v28 = vadd.f32 %v1226_v27, %v1225_v26 }
 0x44f   : > { %1228 = vadd.xlane.f32.xlu1 %v1227_v28 }
 0x4dc   : > { %v1229_v54 = vpop.xlane.xlu1 %1228 }
 0x4dd   : > { %v1230_v29 = vrot.slane %v1229_v54, 4 }
 0x4df   : > { %v1231_v30 = vadd.f32 %v1230_v29, %v1229_v54 }
 0x4e1   : > { %v1232_v31 = vrot.slane %v1231_v30, 2 }
 0x4e3   : > { %v1233_v33 = vadd.f32 %v1232_v31, %v1231_v30 }
 0x4e5   : > { %v1234_v34 = vrot.slane %v1233_v33, 1 }
 0x4e7   : > { %v1235_v35 = vadd.f32 %v1234_v34, %v1233_v33 }
 0x4e9   : > { %1819 = vpush %v1235_v35 }
 0x51a   : > { %s1820_s13 = spop %1819 }
 0x51b   : > { %s1239_s14 = smul.f32 0.03125, %s1820_s13 }
 0x51d   : > { %s1240_s15 = sadd.f32 1e-05, %s1239_s14 }
 0x51f   : > { %v1241_v37 = vstv %s1240_s15 }
 0x520   : > { %1892 = vrsqrt.f32 %v1241_v37 }
 0x52a   : > { %v1893_v38 = vpop.eup %1892 }
 0x52b   : > { %1821 = vpush %v1893_v38 }
 0x55c   : > { %s1822_s16 = spop %1821 }
 0x55d   : > { %v1244_v39 = vstv %s1822_s16 }
 0x55e   : > { %v1245_v40 = vmul.f32 %v1244_v39, %v1219_v20  ;;  %v1246_v41 = vmul.f32 %v1244_v39, %v1220_v21  ;;  %v1394_v21 = vmul.f32 %v2323_v4, %v2275_v53  ;;  %v1370_v53 = vpop.xlane.xlu0 %1369 }
 0x55f   : > { %vm1376_vm10 = vcmp.eq.f32.partialorder %v1370_v53, inf  ;;  %v1379_v15 = vand.u32 2147483648, %v1370_v53  ;;  %vm1378_vm12 = vcmp.eq.f32.partialorder %v1370_v53, 0.0 }
 0x560   : > { %v1247_v42 = vsel %vm1202_vm7, %v1245_v40, -inf  ;;  %v1248_v23 = vsel %vm1202_vm7, %v1246_v41, -inf  ;;  %v1396_v11 = vpack.c.bf16 %v1394_v21, %v1394_v21 }
 0x561   : > { %v1249_v7 = vmax.f32 %v1247_v42, %v1248_v23 }
 0x562   : > { %v1373_v4 = vpop.xlane.xlu0 %1372 }
 0x563   : > { %v1250_v32 = vrot.slane %v1249_v7, 4  ;;  %vm1383_vm11 = vcmp.eq.f32.partialorder %v1373_v4, inf  ;;  %vm1385_vm13 = vcmp.eq.f32.partialorder %v1373_v4, 0.0 }
 0x565   : > { %v1251_v43 = vmax.f32 %v1249_v7, %v1250_v32 }
 0x567   : > { %v1252_v45 = vrot.slane %v1251_v43, 2 }
 0x569   : > { %v1253_v9 = vmax.f32 %v1251_v43, %v1252_v45 }
 0x56b   : > { %v1254_v47 = vrot.slane %v1253_v9, 1 }
 0x56d   : > { %v1255_v49 = vmax.f32 %v1253_v9, %v1254_v47 }
 0x56f   : > { %v1256_v50 = vsub.f32 %v1245_v40, %v1255_v49  ;;  %v1257_v52 = vsub.f32 %v1246_v41, %v1255_v49 }
 0x571   : > { %v1258_v55 = vmul.f32 1.442695, %v1256_v50  ;;  %v1260_v56 = vmul.f32 1.442695, %v1257_v52 }
 0x573   : > { %1894 = vpow2.f32 %v1258_v55 }
 0x574   : > { %1896 = vpow2.f32 %v1260_v56 }
 0x57d   : > { %v1895_v51 = vpop.eup %1894 }
 0x57e   : > { %v1897_v57 = vpop.eup %1896  ;;  %v1262_v46 = vsel %vm1202_vm7, %v1895_v51, 0.0 }
 0x57f   : > { %v1263_v61 = vsel %vm1202_vm7, %v1897_v57, 0.0 }
 0x580   : > { %v1264_v62 = vadd.f32 %v1263_v61, %v1262_v46 }
 0x582   : > { %v1265_v63 = vrot.slane %v1264_v62, 4 }
 0x584   : > { %v1266_v2 = vadd.f32 %v1265_v63, %v1264_v62 }
 0x586   : > { %v1267_v5 = vrot.slane %v1266_v2, 2 }
 0x588   : > { %v1268_v8 = vadd.f32 %v1267_v5, %v1266_v2 }
 0x58a   : > { %v1269_v10 = vrot.slane %v1268_v8, 1 }
 0x58c   : > { %v1270_v18 = vadd.f32 %v1269_v10, %v1268_v8 }
 0x58e   : > { %1898 = vrcp.f32 %v1270_v18 }
 0x58f   : > { %1900 = vrsqrt.f32 %v1370_v53 }
 0x590   : > { %1902 = vrsqrt.f32 %v1373_v4 }
 0x598   : > { %v1899_v6 = vpop.eup %1898 }
 0x599   : > { %v1272_v3 = vmul.f32 %v1899_v6, %v1895_v51  ;;  %v1273_v19 = vmul.f32 %v1899_v6, %v1897_v57  ;;  %v1901_v58 = vpop.eup %1900 }
 0x59a   : > { %v1903_v60 = vpop.eup %1902 }
 0x59b   : > { %v1274_v20 = vpack.c.bf16 %v1273_v19, %v1272_v3  ;;  %v1382_v22 = vmul.f32 %v1903_v60, %v1373_v4 }
 0x59d   : > { %1277 = vxpose.xlu1.c.b16.start.end [1/1] (short) (narrow) %v1274_v20, 16  ;;  %v1384_v48 = vsel %vm1383_vm11, %v1373_v4, %v1382_v22 }
 0x603   : > { %v1285_v0 = vpop.trf.xlu1 }
 0x604   : > { %1788 = vmatmul.mubr.msk.bf16.vlgmr.msra.gmra.mrb[24].mxu1 %vm890_vm0, %v1285_v0 }
 0x605   : > { %1401 = vmatpush1.bf16.xpose.msra.mxu1 %v1396_v11  ;;  %1432 = vmatprep.mubr.bf16.mxu1 %v1399_v1  ;;  %v1375_v1 = vmul.f32 %v1901_v58, %v1370_v53 }
 0x606   : > { %1540 = vmatprep.subr.bf16.mxu1 %v1520_v17 }
 0x607   : > { %v1377_v13 = vsel %vm1376_vm10, %v1370_v53, %v1375_v1 }
 0x608   : > { %v1380_v59 = vsel %vm1378_vm12, %v1379_v15, %v1377_v13 }
 0x609   : > { %v1388_v14 = vmax.f32 %v1380_v59, 1e-12 }
 0x60b   : > { %1904 = vrcp.f32 %v1388_v14 }
 0x60c   : > { %1433 = vmatmul.mubr.bf16.vlgmr.msra.gmra.mrb[28].mxu1 %v1398_v44  ;;  %v1386_v44 = vand.u32 2147483648, %v1373_v4 }
 0x60d   : > { %1541 = vmatpush1.bf16.msra.mxu1 %v1519_v16  ;;  %1572 = vmatprep.mubr.bf16.mxu1 %v1939_v24 }
 0x60e   : > { %v1387_v12 = vsel %vm1385_vm13, %v1386_v44, %v1384_v48 }
 0x60f   : > { %v1389_v16 = vmax.f32 %v1387_v12, 1e-12 }
 0x611   : > { %1906 = vrcp.f32 %v1389_v16 }
 0x615   : > { %v1905_v28 = vpop.eup %1904 }
 0x616   : > { %v1441_v29 = vmul.f32 0.0625, %v1905_v28 }
 0x61b   : > { %v1907_v54 = vpop.eup %1906 }
 0x61c   : > { %v1442_v34 = vmul.f32 0.0625, %v1907_v54 }
 0x6d7   : > { %v2351_v17 = vpop.f32.mrb[24].mxu1 }
 0x6d8   : > { %v2353_v25 = vpop.f32.mrb[25].mxu1 }
 0x6d9   : > { %v1334_v26 = vpop.f32.mrb[26].mxu1 }
 0x6da   : > { %v1335_v27 = vpop.f32.mrb[27].mxu1 }
 0x6df   : > { %v1434_v30 = vpop.f32.mrb[28].mxu1 }
 0x6e0   : > { %v1443_v31 = vmul.f32 %v1441_v29, %v1434_v30  ;;  %v1436_v33 = vpop.f32.mrb[29].mxu1 }
 0x6e1   : > { %v1437_v35 = vpop.f32.mrb[30].mxu1 }
 0x6e2   : > { %v1445_v37 = vmul.f32 %v2313_v36, %v1443_v31  ;;  %v1444_v38 = vmul.f32 %v1442_v34, %v1437_v35  ;;  %v1439_v39 = vpop.f32.mrb[31].mxu1 }
 0x6e4   : > { %v1446_v40 = vmul.f32 %v2313_v36, %v1444_v38  ;;  %v1447_v41 = vsel %vm1202_vm7, %v1445_v37, 0.0 }
 0x6e6   : > { %v1448_v42 = vsel %vm1202_vm7, %v1446_v40, 0.0 }
 0x6e7   : > { %v1449_v23 = vadd.f32 %v1448_v42, %v1447_v41 }
 0x6e9   : > { %1450 = vadd.xlane.f32.xlu0 %v1449_v23 }
 0x776   : > { %v1451_v7 = vpop.xlane.xlu0 %1450 }
 0x777   : > { %v1452_v32 = vrot.slane %v1451_v7, 4 }
 0x779   : > { %v1453_v43 = vadd.f32 %v1452_v32, %v1451_v7 }
 0x77b   : > { %v1454_v45 = vrot.slane %v1453_v43, 2 }
 0x77d   : > { %v1455_v9 = vadd.f32 %v1454_v45, %v1453_v43  ;;  %v1875_v45 = vld [vmem:[%s2390_s3] sm:$0xff]  }
 0x77f   : > { %v1456_v47 = vrot.slane %v1455_v9, 1 }
 0x781   : > { %v1457_v49 = vadd.f32 %v1456_v47, %v1455_v9 }
 0x783   : > { %1823 = vpush %v1457_v49 }
 0x7b4   : > { %s1824_s17 = spop %1823 }
 0x7b5   : > { %s1461_s21 = smul.f32 0.03125, %s1824_s17 }
 0x7b7   : > { %v1462_v50 = vstv %s1461_s21 }
 0x7b8   : > { %v1463_v52 = vsub.f32 %v1443_v31, %v1462_v50  ;;  %v1464_v55 = vsub.f32 %v1444_v38, %v1462_v50 }
 0x7ba   : > { %v1465_v56 = vmul.f32 %v2313_v36, %v1463_v52  ;;  %v1466_v51 = vmul.f32 %v2313_v36, %v1464_v55 }
 0x7bc   : > { %v1467_v57 = vmul.f32 %v1465_v56, %v1465_v56  ;;  %v1468_v46 = vmul.f32 %v1466_v51, %v1466_v51 }
 0x7be   : > { %v1469_v61 = vsel %vm1202_vm7, %v1467_v57, 0.0  ;;  %v1470_v62 = vsel %vm1202_vm7, %v1468_v46, 0.0 }
 0x7bf   : > { %v1471_v63 = vadd.f32 %v1470_v62, %v1469_v61 }
 0x7c1   : > { %1472 = vadd.xlane.f32.xlu0 %v1471_v63 }
 0x84e   : > { %v1473_v2 = vpop.xlane.xlu0 %1472 }
 0x84f   : > { %v1474_v5 = vrot.slane %v1473_v2, 4 }
 0x851   : > { %v1475_v8 = vadd.f32 %v1474_v5, %v1473_v2 }
 0x853   : > { %v1476_v10 = vrot.slane %v1475_v8, 2 }
 0x855   : > { %v1477_v18 = vadd.f32 %v1476_v10, %v1475_v8 }
 0x857   : > { %v1478_v6 = vrot.slane %v1477_v18, 1 }
 0x859   : > { %v1479_v3 = vadd.f32 %v1478_v6, %v1477_v18 }
 0x85b   : > { %1825 = vpush %v1479_v3 }
 0x88c   : > { %s1826_s22 = spop %1825 }
 0x88d   : > { %s1483_s23 = smul.f32 0.03125, %s1826_s22 }
 0x88f   : > { %s1484_s24 = sadd.f32 1e-05, %s1483_s23 }
 0x891   : > { %v1485_v36 = vstv %s1484_s24 }
 0x892   : > { %1908 = vrsqrt.f32 %v1485_v36 }
 0x89c   : > { %v1909_v19 = vpop.eup %1908 }
 0x89d   : > { %1827 = vpush %v1909_v19 }
 0x8ce   : > { %s1828_s25 = spop %1827 }
 0x8cf   : > { %v1488_v20 = vstv %s1828_s25 }
 0x8d0   : > { %v1489_v21 = vmul.f32 %v1488_v20, %v1463_v52  ;;  %v1490_v0 = vmul.f32 %v1488_v20, %v1464_v55 }
 0x8d2   : > { %v1491_v11 = vsel %vm1202_vm7, %v1489_v21, -inf  ;;  %v1492_v53 = vsel %vm1202_vm7, %v1490_v0, -inf }
 0x8d3   : > { %v1493_v4 = vmax.f32 %v1491_v11, %v1492_v53 }
 0x8d5   : > { %v1494_v58 = vrot.slane %v1493_v4, 4 }
 0x8d7   : > { %v1495_v60 = vmax.f32 %v1493_v4, %v1494_v58 }
 0x8d9   : > { %v1496_v1 = vrot.slane %v1495_v60, 2 }
 0x8db   : > { %v1497_v22 = vmax.f32 %v1495_v60, %v1496_v1 }
 0x8dd   : > { %v1498_v13 = vrot.slane %v1497_v22, 1 }
 0x8df   : > { %v1499_v15 = vmax.f32 %v1497_v22, %v1498_v13 }
 0x8e1   : > { %v1500_v48 = vsub.f32 %v1489_v21, %v1499_v15  ;;  %v1501_v59 = vsub.f32 %v1490_v0, %v1499_v15 }
 0x8e3   : > { %v1502_v44 = vmul.f32 1.442695, %v1500_v48  ;;  %v1504_v12 = vmul.f32 1.442695, %v1501_v59 }
 0x8e5   : > { %1910 = vpow2.f32 %v1502_v44 }
 0x8e6   : > { %1912 = vpow2.f32 %v1504_v12 }
 0x8ef   : > { %v1911_v14 = vpop.eup %1910 }
 0x8f0   : > { %v1913_v16 = vpop.eup %1912  ;;  %v1506_v26 = vsel %vm1202_vm7, %v1911_v14, 0.0 }
 0x8f1   : > { %v1507_v27 = vsel %vm1202_vm7, %v1913_v16, 0.0 }
 0x8f2   : > { %v1508_v28 = vadd.f32 %v1507_v27, %v1506_v26 }
 0x8f4   : > { %v1509_v54 = vrot.slane %v1508_v28, 4 }
 0x8f6   : > { %v1510_v29 = vadd.f32 %v1509_v54, %v1508_v28 }
 0x8f8   : > { %v1511_v30 = vrot.slane %v1510_v29, 2 }
 0x8fa   : > { %v1512_v31 = vadd.f32 %v1511_v30, %v1510_v29 }
 0x8fc   : > { %v1513_v33 = vrot.slane %v1512_v31, 1 }
 0x8fe   : > { %v1514_v34 = vadd.f32 %v1513_v33, %v1512_v31 }
 0x900   : > { %1914 = vrcp.f32 %v1514_v34 }
 0x90a   : > { %v1915_v35 = vpop.eup %1914 }
 0x90b   : > { %v1516_v37 = vmul.f32 %v1915_v35, %v1911_v14  ;;  %v1517_v38 = vmul.f32 %v1915_v35, %v1913_v16 }
 0x90d   : > { %v1518_v39 = vpack.c.bf16 %v1517_v38, %v1516_v37 }
 0x90f   : > { %1521 = vxpose.xlu0.c.b16.start.end [1/1] (short) (narrow) %v1518_v39, 16 }
 0x975   : > { %v1529_v40 = vpop.trf.xlu0 }
 0x976   : > { %1789 = vmatmul.mubr.msk.bf16.vlgmr.msra.gmra.mrb[32].mxu1 %vm890_vm0, %v1529_v40 }
 0x977   : > { %1631 = vmatprep.mubr.bf16.mxu1 %v1939_v24 }
 0xa49   : > { %v1574_v41 = vpop.f32.mrb[32].mxu1 }
 0xa4a   : > { %v1589_v42 = vpack.c.bf16 %v1574_v41, %v2351_v17  ;;  %v1576_v23 = vpop.f32.mrb[33].mxu1 }
 0xa4b   : > { %v1590_v7 = vpack.c.bf16 %v1576_v23, %v2353_v25  ;;  %v1578_v32 = vpop.f32.mrb[34].mxu1 }
 0xa4c   : > { %v1579_v43 = vpop.f32.mrb[35].mxu1 }
 0xa4d   : > { %1599 = vmatprep.subr.bf16.mxu1 %v1590_v7 }
 0xa4e   : > { %1600 = vmatpush1.bf16.msra.mxu1 %v1589_v42 }
 0xa51   : > { %1791 = vmatmul.mubr.msk.bf16.vlgmr.msra.gmra.mrb[36].mxu1 %vm890_vm0, %v1875_v45 }
 0xb24   : > { %v1633_v24 = vpop.f32.mrb[36].mxu1 }
 0xb25   : > { %1642 = vst [vmem:[%s232_s30] sm:$0xff] %v1633_v24  ;;  %v1635_v17 = vpop.f32.mrb[37].mxu1  ;;  %v1655_v9 = vmul.f32 %v1633_v24, %v1633_v24 }
 0xb26   : > { %1643 = vst [vmem:[%s232_s30 + $0x8] sm:$0xff] %v1635_v17  ;;  %v1646_v25 = vadd.f32 %v1635_v17, %v1633_v24  ;;  %v1637_v47 = vpop.f32.mrb[38].mxu1  ;;  %v1656_v49 = vmul.f32 %v1635_v17, %v1635_v17 }
 0xb27   : > { %1644 = vst [vmem:[%s232_s30 + $0x10] sm:$0xff] %v1637_v47  ;;  %v1639_v50 = vpop.f32.mrb[39].mxu1  ;;  %v1657_v52 = vmul.f32 %v1637_v47, %v1637_v47 }
 0xb28   : > { %1647 = vadd.xlane.f32.xlu1 %v1646_v25  ;;  %1645 = vst [vmem:[%s232_s30 + $0x18] sm:$0xff] %v1639_v50  ;;  %v1658_v55 = vmul.f32 %v1639_v50, %v1639_v50  ;;  %v1649_v56 = vadd.f32 %v1639_v50, %v1637_v47  ;;  %v1659_v51 = vadd.f32 %v1656_v49, %v1655_v9 }
 0xb2a   : > { %v1662_v57 = vadd.f32 %v1658_v55, %v1657_v52 }
 0xb2c   : > { %1650 = vadd.xlane.f32.xlu1 %v1649_v56  ;;  %1663 = vadd.xlane.f32.xlu0 %v1662_v57 }
 0xb30   : > { %1660 = vadd.xlane.f32.xlu1 %v1659_v51 }
 0xbb5   : > { %v1648_v46 = vpop.xlane.xlu1 %1647 }
 0xbb6   : > { %1653 = vst.msk [vmem:[%s237_s8] sm:$0xff] %vm1652_vm14, %v1648_v46 }
 0xbb9   : > { %v1651_v61 = vpop.xlane.xlu1 %1650  ;;  %v1664_v62 = vpop.xlane.xlu0 %1663 }
 0xbba   : > { %1654 = vst.msk [vmem:[%s237_s8 + $0x8] sm:$0xff] %vm1652_vm14, %v1651_v61 }
 0xbbb   : > { %1667 = vst.msk [vmem:[%s237_s8 + $0x8] sm:$0xff] %vm1665_vm15, %v1664_v62 }
 0xbbd   : > { %v1661_v63 = vpop.xlane.xlu1 %1660 }
 0xbbe   : > { %1666 = vst.msk [vmem:[%s237_s8] sm:$0xff] %vm1665_vm15, %v1661_v63 }
 0xbbf PF: > { %s16_s18 = sadd.s32 1, %s1922_s18  }
 0xbc0   : > { %p13_p4 = scmp.ge.s32.totalorder %s16_s18, 4  }
 0xbc2   :  { %15 = sbr.rel (!%p13_p4) target bundleno = 1 (0x1), region = 78 }

</bundles_post_ra>
